<compile_context>
chip_gen: v6e
topology: v6e:2x2x1
jax: 0.10.0
libtpu: 0.0.40
codegen_flags: <defaults>
</compile_context>

<pallas_src>
import jax
import jax.numpy as jnp
from jax import lax
from jax.experimental import pallas as pl
from jax.experimental.pallas import tpu as pltpu

Z_DIM = 64
LABEL_DIM = 10
NUM_CLASSES = 10
H1 = 256
H2 = 512
IMG_DIM = 784
IMG_PAD = 896          # 7 * 128 -> lane-dense output stores
BN_EPS = 1e-5


def _generator_kernel(labels_ref, z_ref, ctab_ref,
                      w1z_ref, g1_ref, be1_ref,
                      w2_ref, g2_ref, be2_ref,
                      w3_ref, b3_ref, out_ref):
    labels = labels_ref[...]                                   # (B, 1) int32
    B = labels.shape[0]

    # --- label path: one_hot(B,10) @ class_table(10,256) == emb[labels] @ W1_label ---
    # (Linear1 bias dropped: it cancels exactly under the training-mode BN below.)
    class_ids = lax.broadcasted_iota(jnp.int32, (B, NUM_CLASSES), 1)
    one_hot = (class_ids == labels).astype(jnp.bfloat16)       # (B, 10)

    # --- Linear(74 -> 256): both partial dots bf16 x bf16 on the MXU, f32 accumulate ---
    h1 = jnp.dot(z_ref[...].astype(jnp.bfloat16), w1z_ref[...],
                 preferred_element_type=jnp.float32)           # (B, 256) f32
    h1 = h1 + jnp.dot(one_hot, ctab_ref[...],
                      preferred_element_type=jnp.float32)

    # --- BatchNorm1d(256), training mode (biased batch variance, fused moments),
    #     folded into one scale/shift, then ReLU.  Element-wise stays f32 (v5e). ---
    m1 = jnp.mean(h1, axis=0, keepdims=True)
    v1 = jnp.maximum(jnp.mean(h1 * h1, axis=0, keepdims=True) - m1 * m1, 0.0)
    s1 = g1_ref[...] * lax.rsqrt(v1 + BN_EPS)                  # (1, 256)
    t1 = be1_ref[...] - m1 * s1
    h1 = jnp.maximum(h1 * s1 + t1, 0.0)

    # --- Linear(256 -> 512) (bias cancelled by BN) + BatchNorm1d(512) + ReLU ---
    h2 = jnp.dot(h1.astype(jnp.bfloat16), w2_ref[...],
                 preferred_element_type=jnp.float32)           # (B, 512) f32
    m2 = jnp.mean(h2, axis=0, keepdims=True)
    v2 = jnp.maximum(jnp.mean(h2 * h2, axis=0, keepdims=True) - m2 * m2, 0.0)
    s2 = g2_ref[...] * lax.rsqrt(v2 + BN_EPS)                  # (1, 512)
    t2 = be2_ref[...] - m2 * s2
    h2 = jnp.maximum(h2 * s2 + t2, 0.0)

    # --- Linear(512 -> 896 padded) + Tanh; padded lanes are zeros, sliced off outside ---
    h3 = jnp.dot(h2.astype(jnp.bfloat16), w3_ref[...],
                 preferred_element_type=jnp.float32) + b3_ref[...]   # (B, 896) f32
    out_ref[...] = jnp.tanh(h3).astype(out_ref.dtype)


def generator_forward(params, z, labels, *, out_dtype=jnp.float32):
    """Full-batch forward.  One program per call: training-mode BN couples every row,
    so the batch must be resident anyway; the bf16 weight DMA amortizes over B."""
    B = z.shape[0]
    labels2d = labels.reshape(B, 1).astype(jnp.int32)
    args = (
        labels2d,
        z.astype(jnp.float32),
        params["class_table"],                                    # (10, 256) bf16
        params["w1z"],                                            # (64, 256) bf16
        params["g1"], params["be1"],
        params["w2"],                                             # (256, 512) bf16
        params["g2"], params["be2"],
        params["w3p"], params["b3p"],                             # (512, 896) bf16 / (1, 896) f32
    )
    vmem_spec = pl.BlockSpec(memory_space=pltpu.MemorySpace.VMEM)

    out_itemsize = jnp.dtype(out_dtype).itemsize
    weight_bytes = 2 * (NUM_CLASSES * H1 + Z_DIM * H1 + H1 * H2 + H2 * IMG_PAD)
    small_bytes = 4 * (2 * H1 + 2 * H2 + IMG_PAD)
    io_bytes = 4 * B * (1 + Z_DIM) + B * IMG_PAD * out_itemsize
    cost = pl.CostEstimate(
        flops=2 * B * (NUM_CLASSES * H1 + Z_DIM * H1 + H1 * H2 + H2 * IMG_PAD),
        transcendentals=B * IMG_PAD + H1 + H2,                    # tanh + rsqrt
        bytes_accessed=weight_bytes + small_bytes + io_bytes,
    )

    # Scale the scoped-VMEM limit with the batch so large B (weight amortization)
    # doesn't trip the default limit; cap at 64 MiB to stay valid on v7x.
    act_bytes = 4 * B * (Z_DIM + NUM_CLASSES + H1 + H2 + IMG_PAD)
    vmem_limit = int(min(64 << 20, max(16 << 20, 3 * act_bytes + (4 << 20))))

    out_padded = pl.pallas_call(
        _generator_kernel,
        out_shape=jax.ShapeDtypeStruct((B, IMG_PAD), out_dtype),
        in_specs=[vmem_spec] * len(args),
        out_specs=vmem_spec,
        cost_estimate=cost,
        compiler_params=pltpu.CompilerParams(vmem_limit_bytes=vmem_limit),
    )(*args)
    return out_padded[:, :IMG_DIM]


def init_params(key):
    """Deterministic init mirroring PyTorch defaults, pre-transformed for the kernel:
       - Linear weights stored as (in, out) so the kernel computes x @ W (+ b).
       - class_table = emb @ W1[:, Z_DIM:] (label half of Linear1; b1/b2 dropped — they
         cancel exactly under the training-mode BatchNorm that follows each layer).
       - MXU weights cast to bf16; W3/b3 zero-padded 784 -> 896 on the output axis.
    """
    ks = jax.random.split(key, 8)

    def linear(kw, kb, fan_in, fan_out):
        bound = 1.0 / jnp.sqrt(fan_in)
        w = jax.random.uniform(kw, (fan_in, fan_out), jnp.float32, -bound, bound)
        b = jax.random.uniform(kb, (1, fan_out), jnp.float32, -bound, bound)
        return w, b

    emb = jax.random.normal(ks[0], (NUM_CLASSES, LABEL_DIM), jnp.float32)
    w1, _b1 = linear(ks[1], ks[2], Z_DIM + LABEL_DIM, H1)   # b1 cancels under BN
    w2, _b2 = linear(ks[3], ks[4], H1, H2)                  # b2 cancels under BN
    w3, b3 = linear(ks[5], ks[6], H2, IMG_DIM)

    class_table = emb @ w1[Z_DIM:]                           # (10, 256), no bias
    w3p = jnp.zeros((H2, IMG_PAD), jnp.float32).at[:, :IMG_DIM].set(w3)
    b3p = jnp.zeros((1, IMG_PAD), jnp.float32).at[:, :IMG_DIM].set(b3)

    return {
        "class_table": class_table.astype(jnp.bfloat16),
        "w1z": w1[:Z_DIM].astype(jnp.bfloat16),
        "g1": jnp.ones((1, H1), jnp.float32), "be1": jnp.zeros((1, H1), jnp.float32),
        "w2": w2.astype(jnp.bfloat16),
        "g2": jnp.ones((1, H2), jnp.float32), "be2": jnp.zeros((1, H2), jnp.float32),
        "w3p": w3p.astype(jnp.bfloat16), "b3p": b3p,
    }


if __name__ == "__main__":
    key = jax.random.PRNGKey(0)
    k_param, k_z, k_lab = jax.random.split(key, 3)

    params = init_params(k_param)

    B = 8
    z = jax.random.normal(k_z, (B, Z_DIM), jnp.float32)
    labels = jax.random.randint(k_lab, (B,), 0, NUM_CLASSES, jnp.int32)

    img = generator_forward(params, z, labels)
    img = jax.block_until_ready(img)

    assert img.shape == (B, IMG_DIM)
    assert img.dtype == jnp.float32
    assert bool(jnp.all(jnp.isfinite(img)))
    assert bool(jnp.all(jnp.abs(img) <= 1.0))  # tanh output range
    print("KERNEL_OK")
</pallas_src>

<mosaic_0001>
module attributes {stable_mosaic.version = 11 : i64} {
  func.func @_generator_kernel(%arg0: memref<8x1xi32, #tpu.memory_space<vmem>>, %arg1: memref<8x64xf32, #tpu.memory_space<vmem>>, %arg2: memref<10x256xbf16, #tpu.memory_space<vmem>>, %arg3: memref<64x256xbf16, #tpu.memory_space<vmem>>, %arg4: memref<1x256xf32, #tpu.memory_space<vmem>>, %arg5: memref<1x256xf32, #tpu.memory_space<vmem>>, %arg6: memref<256x512xbf16, #tpu.memory_space<vmem>>, %arg7: memref<1x512xf32, #tpu.memory_space<vmem>>, %arg8: memref<1x512xf32, #tpu.memory_space<vmem>>, %arg9: memref<512x896xbf16, #tpu.memory_space<vmem>>, %arg10: memref<1x896xf32, #tpu.memory_space<vmem>>, %arg11: memref<8x896xf32, #tpu.memory_space<vmem>>) attributes {dimension_semantics = [], scalar_prefetch = 0 : i64, scratch_operands = 0 : i64, tpu.core_type = #tpu.core_type<tc>} {
    %c0 = arith.constant 0 : index
    %c0_0 = arith.constant 0 : index
    %0 = vector.load %arg0[%c0, %c0_0] : memref<8x1xi32, #tpu.memory_space<vmem>>, vector<8x1xi32>
    %1 = tpu.iota {dimensions = array<i32: 1>} : vector<8x10xi32>
    %2 = vector.broadcast %0 : vector<8x1xi32> to vector<8x10xi32>
    %3 = arith.cmpi eq, %1, %2 : vector<8x10xi32>
    %4 = arith.extui %3 : vector<8x10xi1> to vector<8x10xi32>
    %5 = arith.sitofp %4 : vector<8x10xi32> to vector<8x10xf32>
    %6 = arith.truncf %5 : vector<8x10xf32> to vector<8x10xbf16>
    %c0_1 = arith.constant 0 : index
    %c0_2 = arith.constant 0 : index
    %7 = vector.load %arg1[%c0_1, %c0_2] : memref<8x64xf32, #tpu.memory_space<vmem>>, vector<8x64xf32>
    %8 = arith.truncf %7 : vector<8x64xf32> to vector<8x64xbf16>
    %c0_3 = arith.constant 0 : index
    %c0_4 = arith.constant 0 : index
    %9 = vector.load %arg3[%c0_3, %c0_4] : memref<64x256xbf16, #tpu.memory_space<vmem>>, vector<64x256xbf16>
    %cst = arith.constant dense<0.000000e+00> : vector<8x256xf32>
    %10 = tpu.matmul %8, %9, %cst {dimension_numbers = #tpu.dot_dimension_numbers<[1], [0], [0], [1], [0, 0, 1, 1], [], []>} : vector<8x64xbf16>, vector<64x256xbf16>, vector<8x256xf32> -> vector<8x256xf32>
    %c0_5 = arith.constant 0 : index
    %c0_6 = arith.constant 0 : index
    %11 = vector.load %arg2[%c0_5, %c0_6] : memref<10x256xbf16, #tpu.memory_space<vmem>>, vector<10x256xbf16>
    %cst_7 = arith.constant dense<0.000000e+00> : vector<8x256xf32>
    %12 = tpu.matmul %6, %11, %cst_7 {dimension_numbers = #tpu.dot_dimension_numbers<[1], [0], [0], [1], [0, 0, 1, 1], [], []>} : vector<8x10xbf16>, vector<10x256xbf16>, vector<8x256xf32> -> vector<8x256xf32>
    %13 = arith.addf %10, %12 : vector<8x256xf32>
    %cst_8 = arith.constant dense<0.000000e+00> : vector<256xf32>
    %14 = vector.multi_reduction <add>, %13, %cst_8 [0] : vector<8x256xf32> to vector<256xf32>
    %15 = vector.shape_cast %14 : vector<256xf32> to vector<1x256xf32>
    %cst_9 = arith.constant 8.000000e+00 : f32
    %16 = vector.broadcast %cst_9 : f32 to vector<1x256xf32>
    %17 = arith.divf %15, %16 : vector<1x256xf32>
    %18 = arith.mulf %13, %13 : vector<8x256xf32>
    %cst_10 = arith.constant dense<0.000000e+00> : vector<256xf32>
    %19 = vector.multi_reduction <add>, %18, %cst_10 [0] : vector<8x256xf32> to vector<256xf32>
    %20 = vector.shape_cast %19 : vector<256xf32> to vector<1x256xf32>
    %cst_11 = arith.constant 8.000000e+00 : f32
    %21 = vector.broadcast %cst_11 : f32 to vector<1x256xf32>
    %22 = arith.divf %20, %21 : vector<1x256xf32>
    %23 = arith.mulf %17, %17 : vector<1x256xf32>
    %24 = arith.subf %22, %23 : vector<1x256xf32>
    %cst_12 = arith.constant 0.000000e+00 : f32
    %25 = vector.broadcast %cst_12 : f32 to vector<1x256xf32>
    %26 = arith.maximumf %24, %25 : vector<1x256xf32>
    %c0_13 = arith.constant 0 : index
    %c0_14 = arith.constant 0 : index
    %27 = vector.load %arg4[%c0_13, %c0_14] : memref<1x256xf32, #tpu.memory_space<vmem>>, vector<1x256xf32>
    %cst_15 = arith.constant 9.99999974E-6 : f32
    %28 = vector.broadcast %cst_15 : f32 to vector<1x256xf32>
    %29 = arith.addf %26, %28 : vector<1x256xf32>
    %30 = math.rsqrt %29 : vector<1x256xf32>
    %31 = arith.mulf %27, %30 : vector<1x256xf32>
    %c0_16 = arith.constant 0 : index
    %c0_17 = arith.constant 0 : index
    %32 = vector.load %arg5[%c0_16, %c0_17] : memref<1x256xf32, #tpu.memory_space<vmem>>, vector<1x256xf32>
    %33 = arith.mulf %17, %31 : vector<1x256xf32>
    %34 = arith.subf %32, %33 : vector<1x256xf32>
    %35 = vector.broadcast %31 : vector<1x256xf32> to vector<8x256xf32>
    %36 = arith.mulf %13, %35 : vector<8x256xf32>
    %37 = vector.broadcast %34 : vector<1x256xf32> to vector<8x256xf32>
    %38 = arith.addf %36, %37 : vector<8x256xf32>
    %cst_18 = arith.constant 0.000000e+00 : f32
    %39 = vector.broadcast %cst_18 : f32 to vector<8x256xf32>
    %40 = arith.maximumf %38, %39 : vector<8x256xf32>
    %41 = arith.truncf %40 : vector<8x256xf32> to vector<8x256xbf16>
    %c0_19 = arith.constant 0 : index
    %c0_20 = arith.constant 0 : index
    %42 = vector.load %arg6[%c0_19, %c0_20] : memref<256x512xbf16, #tpu.memory_space<vmem>>, vector<256x512xbf16>
    %cst_21 = arith.constant dense<0.000000e+00> : vector<8x512xf32>
    %43 = tpu.matmul %41, %42, %cst_21 {dimension_numbers = #tpu.dot_dimension_numbers<[1], [0], [0], [1], [0, 0, 1, 1], [], []>} : vector<8x256xbf16>, vector<256x512xbf16>, vector<8x512xf32> -> vector<8x512xf32>
    %cst_22 = arith.constant dense<0.000000e+00> : vector<512xf32>
    %44 = vector.multi_reduction <add>, %43, %cst_22 [0] : vector<8x512xf32> to vector<512xf32>
    %45 = vector.shape_cast %44 : vector<512xf32> to vector<1x512xf32>
    %cst_23 = arith.constant 8.000000e+00 : f32
    %46 = vector.broadcast %cst_23 : f32 to vector<1x512xf32>
    %47 = arith.divf %45, %46 : vector<1x512xf32>
    %48 = arith.mulf %43, %43 : vector<8x512xf32>
    %cst_24 = arith.constant dense<0.000000e+00> : vector<512xf32>
    %49 = vector.multi_reduction <add>, %48, %cst_24 [0] : vector<8x512xf32> to vector<512xf32>
    %50 = vector.shape_cast %49 : vector<512xf32> to vector<1x512xf32>
    %cst_25 = arith.constant 8.000000e+00 : f32
    %51 = vector.broadcast %cst_25 : f32 to vector<1x512xf32>
    %52 = arith.divf %50, %51 : vector<1x512xf32>
    %53 = arith.mulf %47, %47 : vector<1x512xf32>
    %54 = arith.subf %52, %53 : vector<1x512xf32>
    %cst_26 = arith.constant 0.000000e+00 : f32
    %55 = vector.broadcast %cst_26 : f32 to vector<1x512xf32>
    %56 = arith.maximumf %54, %55 : vector<1x512xf32>
    %c0_27 = arith.constant 0 : index
    %c0_28 = arith.constant 0 : index
    %57 = vector.load %arg7[%c0_27, %c0_28] : memref<1x512xf32, #tpu.memory_space<vmem>>, vector<1x512xf32>
    %cst_29 = arith.constant 9.99999974E-6 : f32
    %58 = vector.broadcast %cst_29 : f32 to vector<1x512xf32>
    %59 = arith.addf %56, %58 : vector<1x512xf32>
    %60 = math.rsqrt %59 : vector<1x512xf32>
    %61 = arith.mulf %57, %60 : vector<1x512xf32>
    %c0_30 = arith.constant 0 : index
    %c0_31 = arith.constant 0 : index
    %62 = vector.load %arg8[%c0_30, %c0_31] : memref<1x512xf32, #tpu.memory_space<vmem>>, vector<1x512xf32>
    %63 = arith.mulf %47, %61 : vector<1x512xf32>
    %64 = arith.subf %62, %63 : vector<1x512xf32>
    %65 = vector.broadcast %61 : vector<1x512xf32> to vector<8x512xf32>
    %66 = arith.mulf %43, %65 : vector<8x512xf32>
    %67 = vector.broadcast %64 : vector<1x512xf32> to vector<8x512xf32>
    %68 = arith.addf %66, %67 : vector<8x512xf32>
    %cst_32 = arith.constant 0.000000e+00 : f32
    %69 = vector.broadcast %cst_32 : f32 to vector<8x512xf32>
    %70 = arith.maximumf %68, %69 : vector<8x512xf32>
    %71 = arith.truncf %70 : vector<8x512xf32> to vector<8x512xbf16>
    %c0_33 = arith.constant 0 : index
    %c0_34 = arith.constant 0 : index
    %72 = vector.load %arg9[%c0_33, %c0_34] : memref<512x896xbf16, #tpu.memory_space<vmem>>, vector<512x896xbf16>
    %cst_35 = arith.constant dense<0.000000e+00> : vector<8x896xf32>
    %73 = tpu.matmul %71, %72, %cst_35 {dimension_numbers = #tpu.dot_dimension_numbers<[1], [0], [0], [1], [0, 0, 1, 1], [], []>} : vector<8x512xbf16>, vector<512x896xbf16>, vector<8x896xf32> -> vector<8x896xf32>
    %c0_36 = arith.constant 0 : index
    %c0_37 = arith.constant 0 : index
    %74 = vector.load %arg10[%c0_36, %c0_37] : memref<1x896xf32, #tpu.memory_space<vmem>>, vector<1x896xf32>
    %75 = vector.broadcast %74 : vector<1x896xf32> to vector<8x896xf32>
    %76 = arith.addf %73, %75 : vector<8x896xf32>
    %77 = math.tanh %76 : vector<8x896xf32>
    %c0_38 = arith.constant 0 : index
    %c0_39 = arith.constant 0 : index
    %78 = vector.load %arg11[%c0_38, %c0_39] : memref<8x896xf32, #tpu.memory_space<vmem>>, vector<8x896xf32>
    tpu.vector_store %arg11[%c0_38, %c0_39], %77 {strides = array<i32>} : memref<8x896xf32, #tpu.memory_space<vmem>>, vector<8x896xf32>,
    return
  }
}

</mosaic_0001>

<bundles_post_ra>
// kernel: tpu_custom_call.1
= control target key start
LH: loop header
LB: loop body
LE: loop exit
PB: predicated region body
PF: predicated region fallthrough
CT: control target
= control target key end

     0   :  { %16 = vsyncpa [#allocation3], 0  ;;  %s4082_s0 = inlined_call_operand.vmem [shape: s32[8,1], index: 0, kind: input, shape index: {}]   ;;  %s4083_s1 = inlined_call_operand.vmem [shape: f32[8,64], index: 1, kind: input, shape index: {}]   ;;  %s4084_s2 = inlined_call_operand.hbm [shape: bf16[10,256], index: 2, kind: input, shape index: {}]   ;;  %s4085_s3 = inlined_call_operand.hbm [shape: bf16[64,256], index: 3, kind: input, shape index: {}]   ;;  %s4086_s4 = inlined_call_operand.hbm [shape: f32[1,256], index: 4, kind: input, shape index: {}]   ;;  %s4087_s5 = inlined_call_operand.hbm [shape: f32[1,256], index: 5, kind: input, shape index: {}]   ;;  %s4088_s6 = inlined_call_operand.hbm [shape: bf16[256,512], index: 6, kind: input, shape index: {}]   ;;  %s4089_s7 = inlined_call_operand.vmem [shape: f32[1,512], index: 7, kind: input, shape index: {}]   ;;  %s4090_s8 = inlined_call_operand.vmem [shape: f32[1,512], index: 8, kind: input, shape index: {}]   ;;  %s4091_s9 = inlined_call_operand.hbm [shape: bf16[512,896], index: 9, kind: input, shape index: {}]   ;;  %s4092_s10 = inlined_call_operand.vmem [shape: f32[1,896], index: 10, kind: input, shape index: {}]   ;;  %s4093_s11 = inlined_call_operand.hbm [shape: f32[8,896], index: 11, kind: output, shape index: {}]  }
   0x1   :  { %17 = vsyncpa [#allocation6], 0 }
   0x2   :  { %18 = vsyncpa [#allocation9], 0 }
   0x3   :  { %19 = vsyncpa [#allocation12], 0 }
   0x4   :  { %20 = vsyncpa [#allocation4], 0  ;;  %s3841_s17 = smov [#allocation5]   ;;  %s3842_s19 = smov [#allocation8]  }
   0x5   :  { %s42_s18 = sshll.u32 %s3841_s17, 4  ;;  %s65_s20 = sshll.u32 %s3842_s19, 4  ;;  %s43_s18 = int_to_ptr.vmem [resolvable:$true] %s42_s18  ;;  %s66_s20 = int_to_ptr.vmem [resolvable:$true] %s65_s20 }
   0x6   :  { %s3699_s21 = scalar_lea.vmem %s43_s18, 1024  ;;  %p3704_p1 = scmp.lt.s32.totalorder %s43_s18, %s43_s18 }
   0x7   :  { %p3700_p0 = scmp.ne.s32.totalorder %s43_s18, %s3699_s21  ;;  %p3705_p2 = scmp.lt.s32.totalorder %s3699_s21, %s3699_s21 }
   0x9   :  { %p3706_p3 = por %p3705_p2, %p3704_p1 }
   0xb   :  { %p3707_p4 = pnand %p3706_p3, %p3700_p0 }
   0xd   :  { %3710 = shalt.err (!%p3707_p4)
}
   0xe   :  { %s3843_s22 = smov 128   ;;  %s3844_s23 = smov 8  }
   0xf   :  { %48 = dma.hbm_to_vmem [thread:$0]  %s4085_s3, 1024, %s43_s18, [#allocation6], %s3843_s22, %s3843_s22, %s3844_s23  }
  0x10   :  { %s3719_s26 = scalar_lea.vmem %s66_s20, 32  ;;  %p3724_p6 = scmp.lt.s32.totalorder %s66_s20, %s66_s20 }
  0x11   :  { %p3720_p5 = scmp.ne.s32.totalorder %s66_s20, %s3719_s26  ;;  %p3725_p7 = scmp.lt.s32.totalorder %s3719_s26, %s3719_s26 }
  0x13   :  { %p3726_p8 = por %p3725_p7, %p3724_p6 }
  0x15   :  { %p3727_p9 = pnand %p3726_p8, %p3720_p5 }
  0x17   :  { %3730 = shalt.err (!%p3727_p9)
}
  0x18   :  { %68 = dma.hbm_to_vmem [thread:$0]  %s4087_s5, 32, %s66_s20, [#allocation9]  }
  0x19   :  { %s3845_s29 = smov [#allocation2]   ;;  %s3846_s12 = smov [#allocation7]  }
  0x1a   :  { %s30_s30 = sshll.u32 %s3845_s29, 4  ;;  %s55_s13 = sshll.u32 %s3846_s12, 4  ;;  %s31_s30 = int_to_ptr.vmem [resolvable:$true] %s30_s30  ;;  %s56_s13 = int_to_ptr.vmem [resolvable:$true] %s55_s13 }
  0x1b   :  { %s3739_s14 = scalar_lea.vmem %s31_s30, 256  ;;  %p3744_p11 = scmp.lt.s32.totalorder %s31_s30, %s31_s30 }
  0x1c   :  { %p3740_p10 = scmp.ne.s32.totalorder %s31_s30, %s3739_s14  ;;  %p3745_p12 = scmp.lt.s32.totalorder %s3739_s14, %s3739_s14 }
  0x1e   :  { %p3746_p13 = por %p3745_p12, %p3744_p11 }
  0x20   :  { %p3747_p0 = pnand %p3746_p13, %p3740_p10 }
  0x22   :  { %3750 = shalt.err (!%p3747_p0)
}
  0x23   :  { %36 = dma.hbm_to_vmem [thread:$0]  %s4084_s2, 256, %s31_s30, [#allocation3], %s3843_s22, %s3843_s22, %s3844_s23  }
  0x24   :  { %s3759_s16 = scalar_lea.vmem %s56_s13, 32  ;;  %p3764_p2 = scmp.lt.s32.totalorder %s56_s13, %s56_s13 }
  0x25   :  { %p3760_p1 = scmp.ne.s32.totalorder %s56_s13, %s3759_s16  ;;  %p3765_p3 = scmp.lt.s32.totalorder %s3759_s16, %s3759_s16 }
  0x27   :  { %p3766_p4 = por %p3765_p3, %p3764_p2 }
  0x29   :  { %p3767_p5 = pnand %p3766_p4, %p3760_p1 }
  0x2b   :  { %3770 = shalt.err (!%p3767_p5)
}
  0x2c   :  { %58 = dma.hbm_to_vmem [thread:$0]  %s4086_s4, 32, %s56_s13, [#allocation6]  }
  0x2d   :  { %s3847_s18 = smov [#allocation10]  }
  0x2e   :  { %s74_s19 = sshll.u32 %s3847_s18, 4  ;;  %s75_s19 = int_to_ptr.vmem [resolvable:$true] %s74_s19 }
  0x2f   :  { %s3779_s20 = scalar_lea.vmem %s75_s19, 8192  ;;  %p3784_p7 = scmp.lt.s32.totalorder %s75_s19, %s75_s19 }
  0x30   :  { %p3780_p6 = scmp.ne.s32.totalorder %s75_s19, %s3779_s20  ;;  %p3785_p8 = scmp.lt.s32.totalorder %s3779_s20, %s3779_s20 }
  0x32   :  { %p3786_p9 = por %p3785_p8, %p3784_p7 }
  0x34   :  { %p3787_p10 = pnand %p3786_p9, %p3780_p6 }
  0x36   :  { %3790 = shalt.err (!%p3787_p10)
}
  0x37   :  { %s3848_s2 = smov 256   ;;  %s3849_s21 = smov 16  }
  0x38   :  { %80 = dma.hbm_to_vmem [thread:$0]  %s4088_s6, 8192, %s75_s19, [#allocation9], %s3848_s2, %s3848_s2, %s3849_s21  }
  0x39   :  { %s3850_s24 = smov [#allocation11]  }
  0x3a   :  { %s90_s25 = sshll.u32 %s3850_s24, 4  ;;  %s91_s25 = int_to_ptr.vmem [resolvable:$true] %s90_s25 }
  0x3b   :  { %s3799_s4 = scalar_lea.vmem %s91_s25, 28672  ;;  %p3804_p12 = scmp.lt.s32.totalorder %s91_s25, %s91_s25 }
  0x3c   :  { %p3800_p11 = scmp.ne.s32.totalorder %s91_s25, %s3799_s4  ;;  %p3805_p13 = scmp.lt.s32.totalorder %s3799_s4, %s3799_s4 }
  0x3e   :  { %p3806_p0 = por %p3805_p13, %p3804_p12 }
  0x40   :  { %p3807_p1 = pnand %p3806_p0, %p3800_p11 }
  0x42   :  { %3810 = shalt.err (!%p3807_p1)
}
  0x43   :  { %s3851_s26 = smov 448   ;;  %s3852_s27 = smov 28  }
  0x44   :  { %96 = dma.hbm_to_vmem [thread:$0]  %s4091_s9, 28672, %s91_s25, [#allocation12], %s3851_s26, %s3851_s26, %s3852_s27  }
  0x45   :  { %3831 = dma.done.wait [#allocation3], 256  }
  0x46   :  { %3832 = vsyncadd [#allocation3], 4294967040 }
  0x47   :  { %3833 = dma.done.wait [#allocation6], 1056  }
  0x48   :  { %3834 = vsyncadd [#allocation6], 4294966240 }
  0x49   :  { %3835 = dma.done.wait [#allocation9], 8224  }
  0x4a   :  { %3836 = vsyncadd [#allocation9], 4294959072 }
  0x4b   :  { %3837 = dma.done.wait [#allocation12], 28672  }
  0x4c   :  { %3838 = vsyncadd [#allocation12], 4294938624  ;;  %v3853_v0 = vmov 0   ;;  %v118_v1 = vld [vmem:[%s4082_s0] sm:$0xff]  ;;  %v3234_v2 = vld [vmem:[#allocation5 + $0x34] ss:$8 sps:$4 sm:$0xff]   ;;  %v119_v15 = vlaneseq }
  0x4d   :  { %3233 = vset.pattern.permute.xlu0 %v3853_v0  ;;  %276 = vmatprep.mubr.bf16.mxu1 %v3853_v0  ;;  %v3236_v3 = vld [vmem:[#allocation5 + $0x30] ss:$8 sps:$4 sm:$0xff]   ;;  %v3237_v4 = vld [vmem:[#allocation5 + $0x24] ss:$8 sps:$4 sm:$0xff]   ;;  %v3239_v5 = vld [vmem:[#allocation5 + $0x20] ss:$8 sps:$4 sm:$0xff]  }
  0x4e   :  { %191 = vmatprep.mubr.bf16.mxu0 %v3853_v0  ;;  %122 = vperm.xlu0 %3233, %v118_v1   ;;  %v3240_v6 = vld [vmem:[#allocation5 + $0x14] ss:$8 sps:$4 sm:$0xff]   ;;  %vm152_vm0 = vcmask 1044480   ;;  %v3242_v7 = vld [vmem:[#allocation5 + $0x10] ss:$8 sps:$4 sm:$0xff]   ;;  %v128_v13 = vld [vmem:[%s4083_s1] sm:$0xff] }
  0x4f   :  { %252 = vmatprep.subr.bf16.mxu1 %v3234_v2  ;;  %v3246_v8 = vld [vmem:[#allocation2 + $0x4] ss:$8 sps:$4 sm:$0x1f]   ;;  %v3243_v9 = vld [vmem:[#allocation5 + $0x4] ss:$8 sps:$4 sm:$0xff]   ;;  %v129_v14 = vpack.c.bf16 %v128_v13, %v128_v13  ;;  %vm240_vm1 = vcmask 523264  }
  0x50   :  { %253 = vmatpush1.bf16.msra.mxu1 %v3236_v3  ;;  %v3248_v10 = vld [vmem:[#allocation2] ss:$8 sps:$4 sm:$0x1f]   ;;  %2874 = vmatprep.subr.msk.bf16.mxu0 %vm152_vm0, %v3246_v8  ;;  %v3245_v12 = vld [vmem:[#allocation5] ss:$8 sps:$4 sm:$0xff]   ;;  %v120_v16 = vand.u32 127, %v119_v15 }
  0x51   :  { %254 = vmatprep.subr.bf16.mxu1 %v3237_v4  ;;  %v154_v11 = vsel %vm152_vm0, %v3248_v10, 0  ;;  %v3854_v18 = vmov 0.0   ;;  %vm148_vm3 = vcmask 80896   ;;  %v3251_v21 = vld [vmem:[#allocation10 + $0xe4] ss:$16 sps:$4 sm:$0xff]  }
  0x52   :  { %174 = vmatpush1.bf16.msra.mxu0 %v154_v11  ;;  %v3254_v22 = vld [vmem:[#allocation10 + $0xec] ss:$16 sps:$4 sm:$0xff]   ;;  %v3249_v23 = vld [vmem:[#allocation10 + $0xe0] ss:$16 sps:$4 sm:$0xff]   ;;  %v3252_v24 = vld [vmem:[#allocation10 + $0xe8] ss:$16 sps:$4 sm:$0xff]  }
  0x53   :  { %782 = vmatprep.subr.bf16.mxu0 %v3251_v21  ;;  %v3257_v25 = vld [vmem:[#allocation10 + $0xc4] ss:$16 sps:$4 sm:$0xff]   ;;  %v3260_v26 = vld [vmem:[#allocation10 + $0xcc] ss:$16 sps:$4 sm:$0xff]   ;;  %v3255_v27 = vld [vmem:[#allocation10 + $0xc0] ss:$16 sps:$4 sm:$0xff]  }
  0x54   :  { %255 = vmatpush1.bf16.msra.mxu1 %v3239_v5  ;;  %v3258_v28 = vld [vmem:[#allocation10 + $0xc8] ss:$16 sps:$4 sm:$0xff]   ;;  %v3263_v29 = vld [vmem:[#allocation10 + $0xa4] ss:$16 sps:$4 sm:$0xff]   ;;  %v3266_v30 = vld [vmem:[#allocation10 + $0xac] ss:$16 sps:$4 sm:$0xff]  }
  0x55   :  { %256 = vmatprep.subr.bf16.mxu1 %v3240_v6  ;;  %v3261_v31 = vld [vmem:[#allocation10 + $0xa0] ss:$16 sps:$4 sm:$0xff]   ;;  %v3264_v32 = vld [vmem:[#allocation10 + $0xa8] ss:$16 sps:$4 sm:$0xff]   ;;  %v3269_v33 = vld [vmem:[#allocation10 + $0x84] ss:$16 sps:$4 sm:$0xff]  }
  0x56   :  { %v3272_v34 = vld [vmem:[#allocation10 + $0x8c] ss:$16 sps:$4 sm:$0xff]   ;;  %v3267_v35 = vld [vmem:[#allocation10 + $0x80] ss:$16 sps:$4 sm:$0xff]   ;;  %v3270_v36 = vld [vmem:[#allocation10 + $0x88] ss:$16 sps:$4 sm:$0xff]  }
  0x57   :  { %v3275_v39 = vld [vmem:[#allocation10 + $0x64] ss:$16 sps:$4 sm:$0xff]   ;;  %v3278_v40 = vld [vmem:[#allocation10 + $0x6c] ss:$16 sps:$4 sm:$0xff]   ;;  %v3273_v41 = vld [vmem:[#allocation10 + $0x60] ss:$16 sps:$4 sm:$0xff]  }
  0x58   :  { %257 = vmatpush1.bf16.msra.mxu1 %v3242_v7  ;;  %v3276_v42 = vld [vmem:[#allocation10 + $0x68] ss:$16 sps:$4 sm:$0xff]   ;;  %v3281_v45 = vld [vmem:[#allocation10 + $0x44] ss:$16 sps:$4 sm:$0xff]   ;;  %v3284_v46 = vld [vmem:[#allocation10 + $0x4c] ss:$16 sps:$4 sm:$0xff]  }
  0x59   :  { %258 = vmatprep.subr.bf16.mxu1 %v3243_v9  ;;  %v3279_v47 = vld [vmem:[#allocation10 + $0x40] ss:$16 sps:$4 sm:$0xff]   ;;  %v3282_v48 = vld [vmem:[#allocation10 + $0x48] ss:$16 sps:$4 sm:$0xff]   ;;  %v3287_v49 = vld [vmem:[#allocation10 + $0x24] ss:$16 sps:$4 sm:$0xff]  }
  0x5a   :  { %v3290_v50 = vld [vmem:[#allocation10 + $0x2c] ss:$16 sps:$4 sm:$0xff]   ;;  %v3285_v51 = vld [vmem:[#allocation10 + $0x20] ss:$16 sps:$4 sm:$0xff]   ;;  %v3288_v52 = vld [vmem:[#allocation10 + $0x28] ss:$16 sps:$4 sm:$0xff]  }
  0x5b   :  { %v3293_v53 = vld [vmem:[#allocation10 + $0x4] ss:$16 sps:$4 sm:$0xff]   ;;  %v3296_v54 = vld [vmem:[#allocation10 + $0xc] ss:$16 sps:$4 sm:$0xff]   ;;  %v3291_v55 = vld [vmem:[#allocation10] ss:$16 sps:$4 sm:$0xff]  }
  0x5c   :  { %259 = vmatpush1.bf16.msra.mxu1 %v3245_v12  ;;  %v3294_v56 = vld [vmem:[#allocation10 + $0x8] ss:$16 sps:$4 sm:$0xff]   ;;  %v3299_v57 = vld [vmem:[#allocation10 + $0x1e4] ss:$16 sps:$4 sm:$0xff]   ;;  %v3302_v58 = vld [vmem:[#allocation10 + $0x1ec] ss:$16 sps:$4 sm:$0xff]  }
  0x5d   :  { %823 = vmatprep.subr.bf16.mxu1 %v3254_v22  ;;  %v3297_v59 = vld [vmem:[#allocation10 + $0x1e0] ss:$16 sps:$4 sm:$0xff]   ;;  %v3300_v60 = vld [vmem:[#allocation10 + $0x1e8] ss:$16 sps:$4 sm:$0xff]   ;;  %v3305_v61 = vld [vmem:[#allocation10 + $0x1c4] ss:$16 sps:$4 sm:$0xff]  }
  0x5e   :  { %v3308_v62 = vld [vmem:[#allocation10 + $0x1cc] ss:$16 sps:$4 sm:$0xff]   ;;  %v3303_v63 = vld [vmem:[#allocation10 + $0x1c0] ss:$16 sps:$4 sm:$0xff]   ;;  %v3306_v0 = vld [vmem:[#allocation10 + $0x1c8] ss:$16 sps:$4 sm:$0xff]  }
  0x5f   :  { %2884 = vmatmul.mubr.msk.bf16.vlgmr.msra.gmra.mxu1 %vm240_vm1, %v129_v14  ;;  %v3311_v1 = vld [vmem:[#allocation10 + $0x1a4] ss:$16 sps:$4 sm:$0xff]   ;;  %v3314_v2 = vld [vmem:[#allocation10 + $0x1ac] ss:$16 sps:$4 sm:$0xff]   ;;  %v3309_v3 = vld [vmem:[#allocation10 + $0x1a0] ss:$16 sps:$4 sm:$0xff]  }
  0x60   :  { %824 = vmatpush1.bf16.msra.mxu1 %v3252_v24  ;;  %v3312_v4 = vld [vmem:[#allocation10 + $0x1a8] ss:$16 sps:$4 sm:$0xff]   ;;  %v3317_v5 = vld [vmem:[#allocation10 + $0x184] ss:$16 sps:$4 sm:$0xff]   ;;  %v3320_v6 = vld [vmem:[#allocation10 + $0x18c] ss:$16 sps:$4 sm:$0xff]  }
  0x61   :  { %825 = vmatprep.subr.bf16.mxu1 %v3260_v26  ;;  %v3315_v7 = vld [vmem:[#allocation10 + $0x180] ss:$16 sps:$4 sm:$0xff]   ;;  %v3318_v8 = vld [vmem:[#allocation10 + $0x188] ss:$16 sps:$4 sm:$0xff]   ;;  %v3323_v9 = vld [vmem:[#allocation10 + $0x164] ss:$16 sps:$4 sm:$0xff]  }
  0x62   :  { %v3326_v10 = vld [vmem:[#allocation10 + $0x16c] ss:$16 sps:$4 sm:$0xff]   ;;  %v3321_v11 = vld [vmem:[#allocation10 + $0x160] ss:$16 sps:$4 sm:$0xff]   ;;  %v3324_v12 = vld [vmem:[#allocation10 + $0x168] ss:$16 sps:$4 sm:$0xff]  }
  0x63   :  { %v3329_v13 = vld [vmem:[#allocation10 + $0x144] ss:$16 sps:$4 sm:$0xff]   ;;  %v3332_v14 = vld [vmem:[#allocation10 + $0x14c] ss:$16 sps:$4 sm:$0xff]   ;;  %v3336_v21 = vld [vmem:[#allocation10 + $0x128] ss:$16 sps:$4 sm:$0xff]  }
  0x64   :  { %826 = vmatpush1.bf16.msra.mxu1 %v3258_v28  ;;  %v3341_v22 = vld [vmem:[#allocation10 + $0x104] ss:$16 sps:$4 sm:$0xff]   ;;  %v3339_v24 = vld [vmem:[#allocation10 + $0x100] ss:$16 sps:$4 sm:$0xff]  }
  0x65   :  { %827 = vmatprep.subr.bf16.mxu1 %v3266_v30 }
  0x68   :  { %828 = vmatpush1.bf16.msra.mxu1 %v3264_v32 }
  0x69   :  { %829 = vmatprep.subr.bf16.mxu1 %v3272_v34 }
  0x6c   :  { %830 = vmatpush1.bf16.msra.mxu1 %v3270_v36 }
  0x6d   :  { %831 = vmatprep.subr.bf16.mxu1 %v3278_v40 }
  0x70   :  { %832 = vmatpush1.bf16.msra.mxu1 %v3276_v42 }
  0x71   :  { %833 = vmatprep.subr.bf16.mxu1 %v3284_v46 }
  0x74   :  { %834 = vmatpush1.bf16.msra.mxu1 %v3282_v48 }
  0x75   :  { %835 = vmatprep.subr.bf16.mxu1 %v3290_v50 }
  0x78   :  { %836 = vmatpush1.bf16.msra.mxu1 %v3288_v52 }
  0x79   :  { %837 = vmatprep.subr.bf16.mxu1 %v3296_v54 }
  0x7c   :  { %838 = vmatpush1.bf16.msra.mxu1 %v3294_v56 }
  0x7d   :  { %839 = vmatprep.subr.bf16.mxu1 %v3302_v58 }
  0x80   :  { %840 = vmatpush2.bf16.msra.mxu1 %v3300_v60 }
  0x81   :  { %841 = vmatprep.subr.bf16.mxu1 %v3308_v62 }
  0x84   :  { %842 = vmatpush2.bf16.msra.mxu1 %v3306_v0 }
  0x85   :  { %843 = vmatprep.subr.bf16.mxu1 %v3314_v2 }
  0x88   :  { %844 = vmatpush2.bf16.msra.mxu1 %v3312_v4 }
  0x89   :  { %845 = vmatprep.subr.bf16.mxu1 %v3320_v6  ;;  %v3855_v6 = vmov 1966171168  }
  0x8c   :  { %846 = vmatpush2.bf16.msra.mxu1 %v3318_v8 }
  0x8d   :  { %847 = vmatprep.subr.bf16.mxu1 %v3326_v10 }
  0x90   :  { %848 = vmatpush2.bf16.msra.mxu1 %v3324_v12 }
  0x91   :  { %849 = vmatprep.subr.bf16.mxu1 %v3332_v14 }
  0xc9   :  { %v123_v17 = vpop.permute.xlu0 %122 }
  0xca   :  { %vm124_vm2 = vcmp.eq.s32.totalorder %v120_v16, %v123_v17  ;;  %v3327_v16 = vld [vmem:[#allocation10 + $0x140] ss:$16 sps:$4 sm:$0xff]   ;;  %v3330_v17 = vld [vmem:[#allocation10 + $0x148] ss:$16 sps:$4 sm:$0xff]  }
  0xcb   :  { %v2871_v19 = vsel %vm124_vm2, 1.0, %v3854_v18  ;;  %v3335_v18 = vld [vmem:[#allocation10 + $0x124] ss:$16 sps:$4 sm:$0xff]   ;;  %850 = vmatpush2.bf16.msra.mxu1 %v3330_v17 }
  0xcc   :  { %v127_v20 = vpack.c.bf16 %v2871_v19, %v2871_v19  ;;  %v3338_v19 = vld [vmem:[#allocation10 + $0x12c] ss:$16 sps:$4 sm:$0xff]  }
  0xcd   :  { %851 = vmatprep.subr.bf16.mxu1 %v3338_v19 }
  0xce   :  { %2875 = vmatmul.mubr.msk.bf16.vlgmr.msra.gmra.mxu0 %vm148_vm3, %v127_v20  ;;  %v3333_v20 = vld [vmem:[#allocation10 + $0x120] ss:$16 sps:$4 sm:$0xff]  }
  0xcf   :  { %783 = vmatpush1.bf16.msra.mxu0 %v3249_v23  ;;  %v3344_v23 = vld [vmem:[#allocation10 + $0x10c] ss:$16 sps:$4 sm:$0xff]   ;;  %852 = vmatpush2.bf16.msra.mxu1 %v3336_v21 }
  0xd0   :  { %784 = vmatprep.subr.bf16.mxu0 %v3257_v25  ;;  %v3342_v25 = vld [vmem:[#allocation10 + $0x108] ss:$16 sps:$4 sm:$0xff]   ;;  %853 = vmatprep.subr.bf16.mxu1 %v3344_v23 }
  0xd3   :  { %785 = vmatpush1.bf16.msra.mxu0 %v3255_v27  ;;  %854 = vmatpush2.bf16.msra.mxu1 %v3342_v25 }
  0xd4   :  { %786 = vmatprep.subr.bf16.mxu0 %v3263_v29 }
  0xd7   :  { %787 = vmatpush1.bf16.msra.mxu0 %v3261_v31 }
  0xd8   :  { %788 = vmatprep.subr.bf16.mxu0 %v3269_v33 }
  0xdb   :  { %789 = vmatpush1.bf16.msra.mxu0 %v3267_v35 }
  0xdc   :  { %790 = vmatprep.subr.bf16.mxu0 %v3275_v39 }
  0xdf   :  { %791 = vmatpush1.bf16.msra.mxu0 %v3273_v41 }
  0xe0   :  { %792 = vmatprep.subr.bf16.mxu0 %v3281_v45 }
  0xe3   :  { %793 = vmatpush1.bf16.msra.mxu0 %v3279_v47 }
  0xe4   :  { %794 = vmatprep.subr.bf16.mxu0 %v3287_v49 }
  0xe7   :  { %795 = vmatpush1.bf16.msra.mxu0 %v3285_v51 }
  0xe8   :  { %796 = vmatprep.subr.bf16.mxu0 %v3293_v53 }
  0xeb   :  { %797 = vmatpush1.bf16.msra.mxu0 %v3291_v55 }
  0xec   :  { %798 = vmatprep.subr.bf16.mxu0 %v3299_v57 }
  0xef   :  { %799 = vmatpush2.bf16.msra.mxu0 %v3297_v59 }
  0xf0   :  { %800 = vmatprep.subr.bf16.mxu0 %v3305_v61 }
  0xf3   :  { %801 = vmatpush2.bf16.msra.mxu0 %v3303_v63 }
  0xf4   :  { %802 = vmatprep.subr.bf16.mxu0 %v3311_v1 }
  0xf7   :  { %803 = vmatpush2.bf16.msra.mxu0 %v3309_v3 }
  0xf8   :  { %804 = vmatprep.subr.bf16.mxu0 %v3317_v5 }
  0xfb   :  { %805 = vmatpush2.bf16.msra.mxu0 %v3315_v7  ;;  %v331_v7 = vunpack.c.l.s4 %v3855_v6  ;;  %v3390_v6 = vld [vmem:[#allocation11 + $0x380] ss:$28 sps:$4 sm:$0xff]  }
  0xfc   :  { %806 = vmatprep.subr.bf16.mxu0 %v3323_v9  ;;  %v3961_v9 = vshrl.u32 %v119_v15, 7 }
  0xfd   :  { %v332_v8 = vunpack.c.0.s8 %v331_v7  ;;  %v3395_v7 = vld [vmem:[#allocation11 + $0x34c] ss:$28 sps:$4 sm:$0xff]  }
  0xfe   :  { %v3972_v19 = vsub.s32 1, %v3961_v9 }
  0xff   :  { %807 = vmatpush2.bf16.msra.mxu0 %v3321_v11  ;;  %v3964_v11 = vsub.s32 %v332_v8, %v3961_v9  ;;  %v3398_v8 = vld [vmem:[#allocation11 + $0x6cc] ss:$28 sps:$4 sm:$0xff]  }
 0x100   :  { %808 = vmatprep.subr.bf16.mxu0 %v3329_v13 }
 0x103   :  { %809 = vmatpush2.bf16.msra.mxu0 %v3327_v16  ;;  %v322_v16 = vld [vmem:[#allocation7] sm:$0x3] }
 0x104   :  { %810 = vmatprep.subr.bf16.mxu0 %v3335_v18  ;;  %v3969_v18 = vsub.s32 0, %v3961_v9 }
 0x107   :  { %811 = vmatpush2.bf16.msra.mxu0 %v3333_v20 }
 0x108   :  { %812 = vmatprep.subr.bf16.mxu0 %v3341_v22 }
 0x10b   :  { %813 = vmatpush2.bf16.msra.mxu0 %v3339_v24 }
 0x11f   :  { %v3942_v37 = vpop.f32.mrf.mxu1 }
 0x121   :  { %v3944_v38 = vpop.f32.mrf.mxu1 }
 0x123   :  { %v282_v43 = vpop.f32.mrf.mxu1 }
 0x125   :  { %v283_v44 = vpop.f32.mrf.mxu1 }
 0x18e   :  { %v193_v26 = vpop.f32.mrf.mxu0 }
 0x18f   :  { %v3947_v27 = vadd.f32 %v3942_v37, %v193_v26  ;;  %v346_v26 = vld [vmem:[#allocation8] sm:$0x3] }
 0x190   :  { %v195_v28 = vpop.f32.mrf.mxu0 }
 0x191   :  { %v285_v29 = vrot.slane %v3947_v27, 4  ;;  %v300_v30 = vmul.f32 %v3947_v27, %v3947_v27  ;;  %v3953_v31 = vadd.f32 %v3944_v38, %v195_v28 }
 0x192   :  { %v197_v32 = vpop.f32.mrf.mxu0 }
 0x193   :  { %v286_v33 = vadd.f32 %v285_v29, %v3947_v27  ;;  %v302_v34 = vrot.slane %v300_v30, 4  ;;  %v291_v35 = vrot.slane %v3953_v31, 4  ;;  %v301_v36 = vmul.f32 %v3953_v31, %v3953_v31 }
 0x194   :  { %v198_v37 = vpop.f32.mrf.mxu0 }
 0x195   :  { %v287_v39 = vrot.slane %v286_v33, 2  ;;  %v303_v40 = vadd.f32 %v302_v34, %v300_v30  ;;  %v292_v41 = vadd.f32 %v291_v35, %v3953_v31  ;;  %v308_v42 = vrot.slane %v301_v36, 4 }
 0x197   :  { %v288_v43 = vadd.f32 %v287_v39, %v286_v33  ;;  %v304_v44 = vrot.slane %v303_v40, 2  ;;  %v293_v45 = vrot.slane %v292_v41, 2  ;;  %v309_v38 = vadd.f32 %v308_v42, %v301_v36  ;;  %v3347_v42 = vld [vmem:[#allocation11 + $0x18c] ss:$28 sps:$4 sm:$0xff]  }
 0x198   :  { %2513 = vmatprep.subr.bf16.mxu0 %v3347_v42  ;;  %v3435_v42 = vld [vmem:[#allocation11 + $0x1c0] ss:$28 sps:$4 sm:$0xff]  }
 0x199   :  { %v289_v46 = vrot.slane %v288_v43, 1  ;;  %v305_v47 = vadd.f32 %v304_v44, %v303_v40  ;;  %v294_v48 = vadd.f32 %v293_v45, %v292_v41  ;;  %v310_v49 = vrot.slane %v309_v38, 2  ;;  %v3345_v44 = vld [vmem:[#allocation11 + $0x188] ss:$28 sps:$4 sm:$0xff]   ;;  %v3356_v45 = vld [vmem:[#allocation11 + $0x4d4] ss:$28 sps:$4 sm:$0xff]  }
 0x19b   :  { %v290_v50 = vadd.f32 %v289_v46, %v288_v43  ;;  %v306_v51 = vrot.slane %v305_v47, 1  ;;  %v295_v52 = vrot.slane %v294_v48, 1  ;;  %v311_v53 = vadd.f32 %v310_v49, %v309_v38  ;;  %v3350_v43 = vld [vmem:[#allocation11 + $0x50c] ss:$28 sps:$4 sm:$0xff]   ;;  %v3357_v49 = vld [vmem:[#allocation11 + $0x118] ss:$28 sps:$4 sm:$0xff]  }
 0x19c   :  { %2554 = vmatprep.subr.bf16.mxu1 %v3350_v43  ;;  %v3351_v38 = vld [vmem:[#allocation11 + $0x150] ss:$28 sps:$4 sm:$0xff]   ;;  %v3437_v43 = vld [vmem:[#allocation11 + $0x1c4] ss:$28 sps:$4 sm:$0xff]  }
 0x19d   :  { %v298_v54 = vmul.f32 0.125, %v290_v50  ;;  %v307_v55 = vadd.f32 %v306_v51, %v305_v47  ;;  %v296_v56 = vadd.f32 %v295_v52, %v294_v48  ;;  %v312_v57 = vrot.slane %v311_v53, 1  ;;  %v3354_v46 = vld [vmem:[#allocation11 + $0x4d0] ss:$28 sps:$4 sm:$0xff]   ;;  %v3359_v47 = vld [vmem:[#allocation11 + $0x11c] ss:$28 sps:$4 sm:$0xff]  }
 0x19e   :  { %v3362_v48 = vld [vmem:[#allocation11 + $0x49c] ss:$28 sps:$4 sm:$0xff]   ;;  %v3365_v51 = vld [vmem:[#allocation11 + $0xe4] ss:$28 sps:$4 sm:$0xff]  }
 0x19f   :  { %v314_v58 = vmul.f32 0.125, %v307_v55  ;;  %v316_v59 = vmul.f32 %v298_v54, %v298_v54  ;;  %v313_v60 = vadd.f32 %v312_v57, %v311_v53  ;;  %v299_v61 = vmul.f32 0.125, %v296_v56  ;;  %v3360_v50 = vld [vmem:[#allocation11 + $0x498] ss:$28 sps:$4 sm:$0xff]   ;;  %v3368_v52 = vld [vmem:[#allocation11 + $0x464] ss:$28 sps:$4 sm:$0xff]  }
 0x1a0   :  { %v3363_v53 = vld [vmem:[#allocation11 + $0xe0] ss:$28 sps:$4 sm:$0xff]   ;;  %v3371_v55 = vld [vmem:[#allocation11 + $0xac] ss:$28 sps:$4 sm:$0xff]  }
 0x1a1   :  { %v318_v62 = vsub.f32 %v314_v58, %v316_v59  ;;  %v315_v63 = vmul.f32 0.125, %v313_v60  ;;  %v317_v0 = vmul.f32 %v299_v61, %v299_v61  ;;  %v3374_v56 = vld [vmem:[#allocation11 + $0x42c] ss:$28 sps:$4 sm:$0xff]   ;;  %v3377_v59 = vld [vmem:[#allocation11 + $0x74] ss:$28 sps:$4 sm:$0xff]  }
 0x1a2   :  { %v3369_v57 = vld [vmem:[#allocation11 + $0xa8] ss:$28 sps:$4 sm:$0xff]   ;;  %v3380_v60 = vld [vmem:[#allocation11 + $0x3f4] ss:$28 sps:$4 sm:$0xff]  }
 0x1a3   :  { %v320_v1 = vmax.f32 %v318_v62, 0.0  ;;  %v319_v2 = vsub.f32 %v315_v63, %v317_v0  ;;  %v3372_v58 = vld [vmem:[#allocation11 + $0x428] ss:$28 sps:$4 sm:$0xff]   ;;  %v3378_v62 = vld [vmem:[#allocation11 + $0x3f0] ss:$28 sps:$4 sm:$0xff]  }
 0x1a4   :  { %v3383_v63 = vld [vmem:[#allocation11 + $0x3c] ss:$28 sps:$4 sm:$0xff]  }
 0x1a5   :  { %v323_v3 = vadd.f32 1e-05, %v320_v1  ;;  %v321_v4 = vmax.f32 %v319_v2, 0.0  ;;  %v3386_v0 = vld [vmem:[#allocation11 + $0x3bc] ss:$28 sps:$4 sm:$0xff]  }
 0x1a6   :  { %v3381_v1 = vld [vmem:[#allocation11 + $0x38] ss:$28 sps:$4 sm:$0xff]  }
 0x1a7   :  { %v324_v5 = vadd.f32 1e-05, %v321_v4  ;;  %3665 = vrsqrt.f32 %v323_v3  ;;  %v3384_v2 = vld [vmem:[#allocation11 + $0x3b8] ss:$28 sps:$4 sm:$0xff]   ;;  %v3389_v3 = vld [vmem:[#allocation11 + $0x4] ss:$28 sps:$4 sm:$0xff]  }
 0x1a8   :  { %v3392_v4 = vld [vmem:[#allocation11 + $0x384] ss:$28 sps:$4 sm:$0xff]  }
 0x1a9   :  { %3667 = vrsqrt.f32 %v324_v5  ;;  %v3387_v5 = vld [vmem:[#allocation11] ss:$28 sps:$4 sm:$0xff]  }
 0x1b4   :  { %v3666_v10 = vpop.eup %3665 }
 0x1b6   :  { %v3668_v12 = vpop.eup %3667 }
 0x1b7   :  { %v329_v13 = vcombine.low %v3666_v10, %v3668_v12  ;;  %v3393_v10 = vld [vmem:[#allocation11 + $0x348] ss:$28 sps:$4 sm:$0xff]  }
 0x1b8   :  { %v3396_v12 = vld [vmem:[#allocation11 + $0x6c8] ss:$28 sps:$4 sm:$0xff]  }
 0x1b9   :  { %v336_v14 = vrot.slane %v329_v13, %v3964_v11  ;;  %v3401_v13 = vld [vmem:[#allocation11 + $0x314] ss:$28 sps:$4 sm:$0xff]  }
 0x1bb   :  { %v343_v17 = vrot.slane %v336_v14, %v3964_v11  ;;  %v3404_v14 = vld [vmem:[#allocation11 + $0x694] ss:$28 sps:$4 sm:$0xff]  }
 0x1bd   :  { %v345_v20 = vmul.f32 %v343_v17, %v322_v16  ;;  %v3399_v16 = vld [vmem:[#allocation11 + $0x310] ss:$28 sps:$4 sm:$0xff]  }
 0x1be   :  { %v3402_v17 = vld [vmem:[#allocation11 + $0x690] ss:$28 sps:$4 sm:$0xff]  }
 0x1bf   :  { %v351_v15 = vrot.slane %v345_v20, %v3969_v18  ;;  %v355_v21 = vrot.slane %v345_v20, %v3972_v19  ;;  %v3407_v20 = vld [vmem:[#allocation11 + $0x2dc] ss:$28 sps:$4 sm:$0xff]  }
 0x1c1   :  { %v358_v22 = vmul.f32 %v351_v15, %v298_v54  ;;  %v359_v23 = vmul.f32 %v355_v21, %v299_v61  ;;  %v380_v30 = vmul.f32 %v355_v21, %v3953_v31  ;;  %v379_v33 = vmul.f32 %v351_v15, %v3947_v27  ;;  %v3348_v31 = vld [vmem:[#allocation11 + $0x508] ss:$28 sps:$4 sm:$0xff]   ;;  %v3353_v27 = vld [vmem:[#allocation11 + $0x154] ss:$28 sps:$4 sm:$0xff]   ;;  %v3366_v54 = vld [vmem:[#allocation11 + $0x460] ss:$28 sps:$4 sm:$0xff]  }
 0x1c2   :  { %v3375_v61 = vld [vmem:[#allocation11 + $0x70] ss:$28 sps:$4 sm:$0xff]   ;;  %v3410_v15 = vld [vmem:[#allocation11 + $0x65c] ss:$28 sps:$4 sm:$0xff]  }
 0x1c3   :  { %v362_v24 = vcombine.low %v358_v22, %v359_v23  ;;  %v3405_v21 = vld [vmem:[#allocation11 + $0x2d8] ss:$28 sps:$4 sm:$0xff]   ;;  %v3413_v23 = vld [vmem:[#allocation11 + $0x2a4] ss:$28 sps:$4 sm:$0xff]  }
 0x1c4   :  { %v3408_v22 = vld [vmem:[#allocation11 + $0x658] ss:$28 sps:$4 sm:$0xff]  }
 0x1c5   :  { %v369_v25 = vrot.slane %v362_v24, %v3964_v11  ;;  %v3416_v24 = vld [vmem:[#allocation11 + $0x624] ss:$28 sps:$4 sm:$0xff]  }
 0x1c7   :  { %v376_v28 = vrot.slane %v369_v25, %v3964_v11  ;;  %v3411_v25 = vld [vmem:[#allocation11 + $0x2a0] ss:$28 sps:$4 sm:$0xff]  }
 0x1c9   :  { %v378_v29 = vsub.f32 %v346_v26, %v376_v28  ;;  %v3414_v26 = vld [vmem:[#allocation11 + $0x620] ss:$28 sps:$4 sm:$0xff]   ;;  %v3419_v28 = vld [vmem:[#allocation11 + $0x26c] ss:$28 sps:$4 sm:$0xff]  }
 0x1cb   :  { %v389_v32 = vrot.slane %v378_v29, %v3972_v19  ;;  %v385_v34 = vrot.slane %v378_v29, %v3969_v18  ;;  %v3422_v29 = vld [vmem:[#allocation11 + $0x5ec] ss:$28 sps:$4 sm:$0xff]  }
 0x1cd   :  { %v393_v35 = vadd.f32 %v389_v32, %v380_v30  ;;  %v392_v36 = vadd.f32 %v385_v34, %v379_v33  ;;  %v3417_v30 = vld [vmem:[#allocation11 + $0x268] ss:$28 sps:$4 sm:$0xff]   ;;  %v3425_v33 = vld [vmem:[#allocation11 + $0x234] ss:$28 sps:$4 sm:$0xff]  }
 0x1ce   :  { %v3420_v32 = vld [vmem:[#allocation11 + $0x5e8] ss:$28 sps:$4 sm:$0xff]   ;;  %v3428_v34 = vld [vmem:[#allocation11 + $0x5b4] ss:$28 sps:$4 sm:$0xff]  }
 0x1cf   :  { %v395_v37 = vmax.f32 %v393_v35, 0.0  ;;  %v394_v39 = vmax.f32 %v392_v36, 0.0  ;;  %v3423_v35 = vld [vmem:[#allocation11 + $0x230] ss:$28 sps:$4 sm:$0xff]  }
 0x1d0   :  { %v3426_v36 = vld [vmem:[#allocation11 + $0x5b0] ss:$28 sps:$4 sm:$0xff]  }
 0x1d1   :  { %v397_v40 = vpack.c.bf16 %v395_v37, %v395_v37  ;;  %v396_v41 = vpack.c.bf16 %v394_v39, %v394_v39  ;;  %v3431_v37 = vld [vmem:[#allocation11 + $0x1fc] ss:$28 sps:$4 sm:$0xff]  }
 0x1d2   :  { %v3434_v39 = vld [vmem:[#allocation11 + $0x57c] ss:$28 sps:$4 sm:$0xff]  }
 0x1d3   :  { %814 = vmatprep.mubr.bf16.mxu0 %v397_v40  ;;  %855 = vmatprep.mubr.bf16.mxu1 %v397_v40  ;;  %v3429_v40 = vld [vmem:[#allocation11 + $0x1f8] ss:$28 sps:$4 sm:$0xff]  }
 0x1d4   :  { %815 = vmatmul.mubr.bf16.vlgmr.msra.gmra.mxu0 %v396_v41  ;;  %856 = vmatmul.mubr.bf16.vlgmr.msra.gmra.mxu1 %v396_v41  ;;  %v3432_v41 = vld [vmem:[#allocation11 + $0x578] ss:$28 sps:$4 sm:$0xff]  }
 0x1d5   :  { %2514 = vmatpush1.bf16.msra.mxu0 %v3345_v44  ;;  %2555 = vmatpush1.bf16.msra.mxu1 %v3348_v31  ;;  %v3438_v44 = vld [vmem:[#allocation11 + $0x540] ss:$28 sps:$4 sm:$0xff]  }
 0x1d6   :  { %2515 = vmatprep.subr.bf16.mxu0 %v3353_v27  ;;  %2556 = vmatprep.subr.bf16.mxu1 %v3356_v45  ;;  %v3440_v31 = vld [vmem:[#allocation11 + $0x544] ss:$28 sps:$4 sm:$0xff]   ;;  %v3443_v27 = vld [vmem:[#allocation11 + $0x194] ss:$28 sps:$4 sm:$0xff]  }
 0x1d7   :  { %v3446_v45 = vld [vmem:[#allocation11 + $0x514] ss:$28 sps:$4 sm:$0xff]  }
 0x1d9   :  { %2516 = vmatpush1.bf16.msra.mxu0 %v3351_v38  ;;  %2557 = vmatpush1.bf16.msra.mxu1 %v3354_v46 }
 0x1da   :  { %2517 = vmatprep.subr.bf16.mxu0 %v3359_v47  ;;  %2558 = vmatprep.subr.bf16.mxu1 %v3362_v48 }
 0x1dd   :  { %2518 = vmatpush1.bf16.msra.mxu0 %v3357_v49  ;;  %2559 = vmatpush1.bf16.msra.mxu1 %v3360_v50 }
 0x1de   :  { %2519 = vmatprep.subr.bf16.mxu0 %v3365_v51  ;;  %2560 = vmatprep.subr.bf16.mxu1 %v3368_v52 }
 0x1e1   :  { %2520 = vmatpush1.bf16.msra.mxu0 %v3363_v53  ;;  %2561 = vmatpush1.bf16.msra.mxu1 %v3366_v54 }
 0x1e2   :  { %2521 = vmatprep.subr.bf16.mxu0 %v3371_v55  ;;  %2562 = vmatprep.subr.bf16.mxu1 %v3374_v56 }
 0x1e5   :  { %2522 = vmatpush1.bf16.msra.mxu0 %v3369_v57  ;;  %2563 = vmatpush1.bf16.msra.mxu1 %v3372_v58 }
 0x1e6   :  { %2523 = vmatprep.subr.bf16.mxu0 %v3377_v59  ;;  %2564 = vmatprep.subr.bf16.mxu1 %v3380_v60 }
 0x1e9   :  { %2524 = vmatpush1.bf16.msra.mxu0 %v3375_v61  ;;  %2565 = vmatpush1.bf16.msra.mxu1 %v3378_v62 }
 0x1ea   :  { %2525 = vmatprep.subr.bf16.mxu0 %v3383_v63  ;;  %2566 = vmatprep.subr.bf16.mxu1 %v3386_v0 }
 0x1ed   :  { %2526 = vmatpush1.bf16.msra.mxu0 %v3381_v1  ;;  %2567 = vmatpush1.bf16.msra.mxu1 %v3384_v2 }
 0x1ee   :  { %2527 = vmatprep.subr.bf16.mxu0 %v3389_v3  ;;  %2568 = vmatprep.subr.bf16.mxu1 %v3392_v4 }
 0x1f1   :  { %2528 = vmatpush1.bf16.msra.mxu0 %v3387_v5  ;;  %2569 = vmatpush1.bf16.msra.mxu1 %v3390_v6 }
 0x1f2   :  { %2529 = vmatprep.subr.bf16.mxu0 %v3395_v7  ;;  %2570 = vmatprep.subr.bf16.mxu1 %v3398_v8 }
 0x1f5   :  { %2530 = vmatpush2.bf16.msra.mxu0 %v3393_v10  ;;  %2571 = vmatpush2.bf16.msra.mxu1 %v3396_v12 }
 0x1f6   :  { %2531 = vmatprep.subr.bf16.mxu0 %v3401_v13  ;;  %2572 = vmatprep.subr.bf16.mxu1 %v3404_v14 }
 0x1f9   :  { %2532 = vmatpush2.bf16.msra.mxu0 %v3399_v16  ;;  %2573 = vmatpush2.bf16.msra.mxu1 %v3402_v17 }
 0x1fa   :  { %2533 = vmatprep.subr.bf16.mxu0 %v3407_v20  ;;  %2574 = vmatprep.subr.bf16.mxu1 %v3410_v15 }
 0x1fd   :  { %2534 = vmatpush2.bf16.msra.mxu0 %v3405_v21  ;;  %2575 = vmatpush2.bf16.msra.mxu1 %v3408_v22 }
 0x1fe   :  { %2535 = vmatprep.subr.bf16.mxu0 %v3413_v23  ;;  %2576 = vmatprep.subr.bf16.mxu1 %v3416_v24 }
 0x201   :  { %2536 = vmatpush2.bf16.msra.mxu0 %v3411_v25  ;;  %2577 = vmatpush2.bf16.msra.mxu1 %v3414_v26 }
 0x202   :  { %2537 = vmatprep.subr.bf16.mxu0 %v3419_v28  ;;  %2578 = vmatprep.subr.bf16.mxu1 %v3422_v29 }
 0x205   :  { %2538 = vmatpush2.bf16.msra.mxu0 %v3417_v30  ;;  %2579 = vmatpush2.bf16.msra.mxu1 %v3420_v32 }
 0x206   :  { %2539 = vmatprep.subr.bf16.mxu0 %v3425_v33  ;;  %2580 = vmatprep.subr.bf16.mxu1 %v3428_v34 }
 0x209   :  { %2540 = vmatpush2.bf16.msra.mxu0 %v3423_v35  ;;  %2581 = vmatpush2.bf16.msra.mxu1 %v3426_v36 }
 0x20a   :  { %2541 = vmatprep.subr.bf16.mxu0 %v3431_v37  ;;  %2582 = vmatprep.subr.bf16.mxu1 %v3434_v39 }
 0x20d   :  { %2542 = vmatpush2.bf16.msra.mxu0 %v3429_v40  ;;  %2583 = vmatpush2.bf16.msra.mxu1 %v3432_v41 }
 0x20e   :  { %2543 = vmatprep.subr.bf16.mxu0 %v3437_v43  ;;  %2584 = vmatprep.subr.bf16.mxu1 %v3440_v31 }
 0x211   :  { %2544 = vmatpush2.bf16.msra.mxu0 %v3435_v42  ;;  %2585 = vmatpush2.bf16.msra.mxu1 %v3438_v44 }
 0x212   :  { %2595 = vmatprep.subr.bf16.mxu0 %v3443_v27  ;;  %2636 = vmatprep.subr.bf16.mxu1 %v3446_v45 }
 0x294   :  { %v3982_v38 = vpop.f32.mrf.mxu0  ;;  %v3984_v46 = vpop.f32.mrf.mxu1 }
 0x295   :  { %v864_v47 = vrot.slane %v3982_v38, 4  ;;  %v892_v48 = vmul.f32 %v3982_v38, %v3982_v38  ;;  %v876_v49 = vrot.slane %v3984_v46, 4  ;;  %v894_v50 = vmul.f32 %v3984_v46, %v3984_v46 }
 0x296   :  { %v3992_v51 = vpop.f32.mrf.mxu0  ;;  %v3994_v52 = vpop.f32.mrf.mxu1 }
 0x297   :  { %v865_v53 = vadd.f32 %v864_v47, %v3982_v38  ;;  %v896_v54 = vrot.slane %v892_v48, 4  ;;  %v877_v55 = vadd.f32 %v876_v49, %v3984_v46  ;;  %v908_v56 = vrot.slane %v894_v50, 4 }
 0x298   :  { %v870_v57 = vrot.slane %v3992_v51, 4  ;;  %v893_v58 = vmul.f32 %v3992_v51, %v3992_v51  ;;  %v882_v59 = vrot.slane %v3994_v52, 4  ;;  %v895_v60 = vmul.f32 %v3994_v52, %v3994_v52  ;;  %v820_v61 = vpop.f32.mrf.mxu0  ;;  %v861_v62 = vpop.f32.mrf.mxu1 }
 0x299   :  { %v866_v63 = vrot.slane %v865_v53, 2  ;;  %v897_v0 = vadd.f32 %v896_v54, %v892_v48  ;;  %v878_v1 = vrot.slane %v877_v55, 2  ;;  %v909_v2 = vadd.f32 %v908_v56, %v894_v50 }
 0x29a   :  { %v871_v3 = vadd.f32 %v870_v57, %v3992_v51  ;;  %v902_v4 = vrot.slane %v893_v58, 4  ;;  %v883_v5 = vadd.f32 %v882_v59, %v3994_v52  ;;  %v914_v6 = vrot.slane %v895_v60, 4  ;;  %v821_v7 = vpop.f32.mrf.mxu0  ;;  %v862_v8 = vpop.f32.mrf.mxu1 }
 0x29b   :  { %v867_v10 = vadd.f32 %v866_v63, %v865_v53  ;;  %v898_v12 = vrot.slane %v897_v0, 2  ;;  %v879_v13 = vadd.f32 %v878_v1, %v877_v55  ;;  %v910_v14 = vrot.slane %v909_v2, 2 }
 0x29c   :  { %v872_v16 = vrot.slane %v871_v3, 2  ;;  %v903_v17 = vadd.f32 %v902_v4, %v893_v58  ;;  %v884_v20 = vrot.slane %v883_v5, 2  ;;  %v915_v15 = vadd.f32 %v914_v6, %v895_v60 }
 0x29d   :  { %v868_v21 = vrot.slane %v867_v10, 1  ;;  %v899_v22 = vadd.f32 %v898_v12, %v897_v0  ;;  %v880_v23 = vrot.slane %v879_v13, 1  ;;  %v911_v24 = vadd.f32 %v910_v14, %v909_v2 }
 0x29e   :  { %v873_v25 = vadd.f32 %v872_v16, %v871_v3  ;;  %v904_v26 = vrot.slane %v903_v17, 2  ;;  %v885_v28 = vadd.f32 %v884_v20, %v883_v5  ;;  %v916_v29 = vrot.slane %v915_v15, 2 }
 0x29f   :  { %v869_v30 = vadd.f32 %v868_v21, %v867_v10  ;;  %v900_v32 = vrot.slane %v899_v22, 1  ;;  %v881_v33 = vadd.f32 %v880_v23, %v879_v13  ;;  %v912_v34 = vrot.slane %v911_v24, 1 }
 0x2a0   :  { %v874_v35 = vrot.slane %v873_v25, 1  ;;  %v905_v36 = vadd.f32 %v904_v26, %v903_v17  ;;  %v886_v37 = vrot.slane %v885_v28, 1  ;;  %v917_v39 = vadd.f32 %v916_v29, %v915_v15 }
 0x2a1   :  { %v888_v40 = vmul.f32 0.125, %v869_v30  ;;  %v901_v41 = vadd.f32 %v900_v32, %v899_v22  ;;  %v890_v42 = vmul.f32 0.125, %v881_v33  ;;  %v913_v43 = vadd.f32 %v912_v34, %v911_v24  ;;  %v936_v22 = vld [vmem:[%s4089_s7] sm:$0xf] }
 0x2a2   :  { %v875_v44 = vadd.f32 %v874_v35, %v873_v25  ;;  %v906_v31 = vrot.slane %v905_v36, 1  ;;  %v887_v27 = vadd.f32 %v886_v37, %v885_v28  ;;  %v918_v45 = vrot.slane %v917_v39, 1 }
 0x2a3   :  { %v920_v47 = vmul.f32 0.125, %v901_v41  ;;  %v924_v48 = vmul.f32 %v888_v40, %v888_v40  ;;  %v922_v49 = vmul.f32 0.125, %v913_v43  ;;  %v926_v50 = vmul.f32 %v890_v42, %v890_v42 }
 0x2a4   :  { %v889_v53 = vmul.f32 0.125, %v875_v44  ;;  %v907_v54 = vadd.f32 %v906_v31, %v905_v36  ;;  %v891_v55 = vmul.f32 0.125, %v887_v27  ;;  %v919_v56 = vadd.f32 %v918_v45, %v917_v39  ;;  %v975_v31 = vld [vmem:[%s4090_s8] sm:$0xf] }
 0x2a5   :  { %v928_v57 = vsub.f32 %v920_v47, %v924_v48  ;;  %v930_v58 = vsub.f32 %v922_v49, %v926_v50  ;;  %v4013_v24 = vsub.s32 2, %v3961_v9  ;;  %v4016_v25 = vsub.s32 3, %v3961_v9 }
 0x2a6   :  { %v921_v59 = vmul.f32 0.125, %v907_v54  ;;  %v925_v60 = vmul.f32 %v889_v53, %v889_v53  ;;  %v923_v61 = vmul.f32 0.125, %v919_v56  ;;  %v927_v62 = vmul.f32 %v891_v55, %v891_v55 }
 0x2a7   :  { %v932_v63 = vmax.f32 %v928_v57, 0.0  ;;  %v934_v0 = vmax.f32 %v930_v58, 0.0 }
 0x2a8   :  { %v929_v1 = vsub.f32 %v921_v59, %v925_v60  ;;  %v931_v2 = vsub.f32 %v923_v61, %v927_v62  ;;  %v3444_v61 = vld [vmem:[#allocation11 + $0x510] ss:$28 sps:$4 sm:$0xff]  }
 0x2a9   :  { %v937_v3 = vadd.f32 1e-05, %v932_v63  ;;  %v939_v4 = vadd.f32 1e-05, %v934_v0  ;;  %v3449_v0 = vld [vmem:[#allocation11 + $0x15c] ss:$28 sps:$4 sm:$0xff]  }
 0x2aa   :  { %v933_v5 = vmax.f32 %v929_v1, 0.0  ;;  %v935_v6 = vmax.f32 %v931_v2, 0.0  ;;  %v3452_v1 = vld [vmem:[#allocation11 + $0x4dc] ss:$28 sps:$4 sm:$0xff]  }
 0x2ab   :  { %3669 = vrsqrt.f32 %v937_v3  ;;  %v3447_v2 = vld [vmem:[#allocation11 + $0x158] ss:$28 sps:$4 sm:$0xff]  }
 0x2ac   :  { %v938_v7 = vadd.f32 1e-05, %v933_v5  ;;  %v940_v8 = vadd.f32 1e-05, %v935_v6  ;;  %3671 = vrsqrt.f32 %v939_v4  ;;  %v3450_v3 = vld [vmem:[#allocation11 + $0x4d8] ss:$28 sps:$4 sm:$0xff]  }
 0x2ad   :  { %v3455_v4 = vld [vmem:[#allocation11 + $0x124] ss:$28 sps:$4 sm:$0xff]  }
 0x2ae   :  { %3673 = vrsqrt.f32 %v938_v7  ;;  %v3458_v5 = vld [vmem:[#allocation11 + $0x4a4] ss:$28 sps:$4 sm:$0xff]  }
 0x2af   :  { %3675 = vrsqrt.f32 %v940_v8  ;;  %v3453_v6 = vld [vmem:[#allocation11 + $0x120] ss:$28 sps:$4 sm:$0xff]   ;;  %v3461_v8 = vld [vmem:[#allocation11 + $0xec] ss:$28 sps:$4 sm:$0xff]  }
 0x2b0   :  { %v3456_v7 = vld [vmem:[#allocation11 + $0x4a0] ss:$28 sps:$4 sm:$0xff]  }
 0x2b8   :  { %v3670_v10 = vpop.eup %3669 }
 0x2b9   :  { %v3672_v12 = vpop.eup %3671 }
 0x2bb   :  { %v3674_v13 = vpop.eup %3673 }
 0x2bc   :  { %v3676_v14 = vpop.eup %3675  ;;  %v949_v16 = vcombine.low %v3670_v10, %v3674_v13  ;;  %v3464_v10 = vld [vmem:[#allocation11 + $0x46c] ss:$28 sps:$4 sm:$0xff]  }
 0x2bd   :  { %v950_v17 = vcombine.low %v3672_v12, %v3676_v14  ;;  %v3459_v12 = vld [vmem:[#allocation11 + $0xe8] ss:$28 sps:$4 sm:$0xff]   ;;  %v3467_v14 = vld [vmem:[#allocation11 + $0xb4] ss:$28 sps:$4 sm:$0xff]  }
 0x2be   :  { %v957_v20 = vrot.slane %v949_v16, %v3964_v11  ;;  %v3462_v13 = vld [vmem:[#allocation11 + $0x468] ss:$28 sps:$4 sm:$0xff]   ;;  %v3470_v16 = vld [vmem:[#allocation11 + $0x434] ss:$28 sps:$4 sm:$0xff]  }
 0x2bf   :  { %v964_v15 = vrot.slane %v950_v17, %v3964_v11  ;;  %v3465_v17 = vld [vmem:[#allocation11 + $0xb0] ss:$28 sps:$4 sm:$0xff]  }
 0x2c1   :  { %v965_v21 = vcombine.low %v957_v20, %v964_v15  ;;  %v3468_v20 = vld [vmem:[#allocation11 + $0x430] ss:$28 sps:$4 sm:$0xff]   ;;  %v3473_v15 = vld [vmem:[#allocation11 + $0x7c] ss:$28 sps:$4 sm:$0xff]  }
 0x2c3   :  { %v972_v23 = vrot.slane %v965_v21, %v3964_v11  ;;  %v3476_v21 = vld [vmem:[#allocation11 + $0x3fc] ss:$28 sps:$4 sm:$0xff]  }
 0x2c5   :  { %v974_v26 = vmul.f32 %v972_v23, %v936_v22  ;;  %v3471_v22 = vld [vmem:[#allocation11 + $0x78] ss:$28 sps:$4 sm:$0xff]  }
 0x2c6   :  { %v3474_v23 = vld [vmem:[#allocation11 + $0x3f8] ss:$28 sps:$4 sm:$0xff]  }
 0x2c7   :  { %v980_v28 = vrot.slane %v974_v26, %v3969_v18  ;;  %v984_v29 = vrot.slane %v974_v26, %v3972_v19  ;;  %v988_v30 = vrot.slane %v974_v26, %v4013_v24  ;;  %v992_v32 = vrot.slane %v974_v26, %v4016_v25  ;;  %v3479_v26 = vld [vmem:[#allocation11 + $0x44] ss:$28 sps:$4 sm:$0xff]  }
 0x2c9   :  { %v997_v33 = vmul.f32 %v980_v28, %v888_v40  ;;  %v998_v34 = vmul.f32 %v984_v29, %v889_v53  ;;  %v999_v35 = vmul.f32 %v988_v30, %v890_v42  ;;  %v1000_v36 = vmul.f32 %v992_v32, %v891_v55 }
 0x2ca   :  { %v1034_v47 = vmul.f32 %v992_v32, %v3994_v52  ;;  %v1032_v40 = vmul.f32 %v984_v29, %v3992_v51  ;;  %v1031_v42 = vmul.f32 %v980_v28, %v3982_v38  ;;  %v1033_v48 = vmul.f32 %v988_v30, %v3984_v46  ;;  %v3441_v46 = vld [vmem:[#allocation11 + $0x190] ss:$28 sps:$4 sm:$0xff]   ;;  %v3482_v28 = vld [vmem:[#allocation11 + $0x3c4] ss:$28 sps:$4 sm:$0xff]  }
 0x2cb   :  { %v1005_v37 = vcombine.low %v997_v33, %v998_v34  ;;  %v1006_v39 = vcombine.low %v999_v35, %v1000_v36  ;;  %v3477_v29 = vld [vmem:[#allocation11 + $0x40] ss:$28 sps:$4 sm:$0xff]   ;;  %v3485_v32 = vld [vmem:[#allocation11 + $0xc] ss:$28 sps:$4 sm:$0xff]   ;;  %v3491_v36 = vld [vmem:[#allocation11 + $0x354] ss:$28 sps:$4 sm:$0xff]  }
 0x2cc   :  { %v3480_v30 = vld [vmem:[#allocation11 + $0x3c0] ss:$28 sps:$4 sm:$0xff]   ;;  %v3488_v33 = vld [vmem:[#allocation11 + $0x38c] ss:$28 sps:$4 sm:$0xff]  }
 0x2cd   :  { %v1013_v41 = vrot.slane %v1005_v37, %v3964_v11  ;;  %v1020_v43 = vrot.slane %v1006_v39, %v3964_v11  ;;  %v3483_v34 = vld [vmem:[#allocation11 + $0x8] ss:$28 sps:$4 sm:$0xff]   ;;  %v3494_v37 = vld [vmem:[#allocation11 + $0x6d4] ss:$28 sps:$4 sm:$0xff]  }
 0x2ce   :  { %v3486_v35 = vld [vmem:[#allocation11 + $0x388] ss:$28 sps:$4 sm:$0xff]   ;;  %v3489_v39 = vld [vmem:[#allocation11 + $0x350] ss:$28 sps:$4 sm:$0xff]  }
 0x2cf   :  { %v1021_v44 = vcombine.low %v1013_v41, %v1020_v43  ;;  %v3492_v41 = vld [vmem:[#allocation11 + $0x6d0] ss:$28 sps:$4 sm:$0xff]   ;;  %v3497_v43 = vld [vmem:[#allocation11 + $0x31c] ss:$28 sps:$4 sm:$0xff]  }
 0x2d1   :  { %v1028_v27 = vrot.slane %v1021_v44, %v3964_v11  ;;  %v3500_v44 = vld [vmem:[#allocation11 + $0x69c] ss:$28 sps:$4 sm:$0xff]  }
 0x2d3   :  { %v1030_v45 = vsub.f32 %v975_v31, %v1028_v27  ;;  %v3495_v31 = vld [vmem:[#allocation11 + $0x318] ss:$28 sps:$4 sm:$0xff]  }
 0x2d4   :  { %v3498_v27 = vld [vmem:[#allocation11 + $0x698] ss:$28 sps:$4 sm:$0xff]  }
 0x2d5   :  { %v1051_v49 = vrot.slane %v1030_v45, %v4016_v25  ;;  %v1043_v50 = vrot.slane %v1030_v45, %v3972_v19  ;;  %v1039_v53 = vrot.slane %v1030_v45, %v3969_v18  ;;  %v1047_v54 = vrot.slane %v1030_v45, %v4013_v24  ;;  %v3503_v45 = vld [vmem:[#allocation11 + $0x2e4] ss:$28 sps:$4 sm:$0xff]  }
 0x2d7   :  { %v1059_v55 = vadd.f32 %v1051_v49, %v1034_v47  ;;  %v1057_v56 = vadd.f32 %v1043_v50, %v1032_v40  ;;  %v1056_v11 = vadd.f32 %v1039_v53, %v1031_v42  ;;  %v1058_v57 = vadd.f32 %v1047_v54, %v1033_v48  ;;  %v3506_v47 = vld [vmem:[#allocation11 + $0x664] ss:$28 sps:$4 sm:$0xff]   ;;  %v3509_v48 = vld [vmem:[#allocation11 + $0x2ac] ss:$28 sps:$4 sm:$0xff]   ;;  %v3515_v54 = vld [vmem:[#allocation11 + $0x274] ss:$28 sps:$4 sm:$0xff]  }
 0x2d8   :  { %v3501_v40 = vld [vmem:[#allocation11 + $0x2e0] ss:$28 sps:$4 sm:$0xff]   ;;  %v3512_v49 = vld [vmem:[#allocation11 + $0x62c] ss:$28 sps:$4 sm:$0xff]  }
 0x2d9   :  { %v1061_v58 = vmax.f32 %v1057_v56, 0.0  ;;  %v1063_v52 = vmax.f32 %v1059_v55, 0.0  ;;  %v1060_v59 = vmax.f32 %v1056_v11, 0.0  ;;  %v1062_v51 = vmax.f32 %v1058_v57, 0.0  ;;  %v3504_v42 = vld [vmem:[#allocation11 + $0x660] ss:$28 sps:$4 sm:$0xff]  }
 0x2da   :  { %v3507_v50 = vld [vmem:[#allocation11 + $0x2a8] ss:$28 sps:$4 sm:$0xff]   ;;  %v3518_v55 = vld [vmem:[#allocation11 + $0x5f4] ss:$28 sps:$4 sm:$0xff]   ;;  %v3521_v57 = vld [vmem:[#allocation11 + $0x23c] ss:$28 sps:$4 sm:$0xff]  }
 0x2db   :  { %v4036_v60 = vpack.c.bf16 %v1061_v58, %v1061_v58  ;;  %v4038_v38 = vpack.c.bf16 %v1063_v52, %v1063_v52  ;;  %v4040_v62 = vpack.c.bf16 %v1060_v59, %v1060_v59  ;;  %v4042_v63 = vpack.c.bf16 %v1062_v51, %v1062_v51  ;;  %v3510_v53 = vld [vmem:[#allocation11 + $0x628] ss:$28 sps:$4 sm:$0xff]   ;;  %v3513_v56 = vld [vmem:[#allocation11 + $0x270] ss:$28 sps:$4 sm:$0xff]   ;;  %v3524_v58 = vld [vmem:[#allocation11 + $0x5bc] ss:$28 sps:$4 sm:$0xff]  }
 0x2dc   :  { %v3516_v11 = vld [vmem:[#allocation11 + $0x5f0] ss:$28 sps:$4 sm:$0xff]   ;;  %v3519_v52 = vld [vmem:[#allocation11 + $0x238] ss:$28 sps:$4 sm:$0xff]   ;;  %v3527_v51 = vld [vmem:[#allocation11 + $0x204] ss:$28 sps:$4 sm:$0xff]  }
 0x2dd   :  { %2545 = vmatprep.mubr.bf16.mxu0 %v4036_v60  ;;  %2586 = vmatprep.mubr.bf16.mxu1 %v4038_v38  ;;  %v3522_v59 = vld [vmem:[#allocation11 + $0x5b8] ss:$28 sps:$4 sm:$0xff]  }
 0x2de   :  { %2546 = vmatmul.mubr.bf16.vlgmr.msra.gmra.mxu0 %v4040_v62  ;;  %2587 = vmatmul.mubr.bf16.vlgmr.msra.gmra.mxu1 %v4042_v63 }
 0x2df   :  { %2596 = vmatpush1.bf16.msra.mxu0 %v3441_v46  ;;  %2637 = vmatpush1.bf16.msra.mxu1 %v3444_v61  ;;  %v3530_v46 = vld [vmem:[#allocation11 + $0x584] ss:$28 sps:$4 sm:$0xff]  }
 0x2e0   :  { %2627 = vmatprep.mubr.bf16.mxu0 %v4036_v60  ;;  %2668 = vmatprep.mubr.bf16.mxu1 %v4038_v38  ;;  %v3525_v61 = vld [vmem:[#allocation11 + $0x200] ss:$28 sps:$4 sm:$0xff]  }
 0x2e1   :  { %2597 = vmatprep.subr.bf16.mxu0 %v3449_v0  ;;  %2638 = vmatprep.subr.bf16.mxu1 %v3452_v1  ;;  %v3528_v0 = vld [vmem:[#allocation11 + $0x580] ss:$28 sps:$4 sm:$0xff]   ;;  %v3533_v1 = vld [vmem:[#allocation11 + $0x1cc] ss:$28 sps:$4 sm:$0xff]  }
 0x2e3   :  { %2598 = vmatpush1.bf16.msra.mxu0 %v3447_v2  ;;  %2639 = vmatpush1.bf16.msra.mxu1 %v3450_v3  ;;  %v3536_v2 = vld [vmem:[#allocation11 + $0x54c] ss:$28 sps:$4 sm:$0xff]  }
 0x2e4   :  { %2599 = vmatprep.subr.bf16.mxu0 %v3455_v4  ;;  %2640 = vmatprep.subr.bf16.mxu1 %v3458_v5  ;;  %v3531_v3 = vld [vmem:[#allocation11 + $0x1c8] ss:$28 sps:$4 sm:$0xff]   ;;  %v3539_v5 = vld [vmem:[#allocation11 + $0x19c] ss:$28 sps:$4 sm:$0xff]  }
 0x2e5   :  { %v3534_v4 = vld [vmem:[#allocation11 + $0x548] ss:$28 sps:$4 sm:$0xff]  }
 0x2e7   :  { %2600 = vmatpush1.bf16.msra.mxu0 %v3453_v6  ;;  %2641 = vmatpush1.bf16.msra.mxu1 %v3456_v7  ;;  %v3542_v6 = vld [vmem:[#allocation11 + $0x51c] ss:$28 sps:$4 sm:$0xff]  }
 0x2e8   :  { %2601 = vmatprep.subr.bf16.mxu0 %v3461_v8  ;;  %2642 = vmatprep.subr.bf16.mxu1 %v3464_v10  ;;  %v3537_v7 = vld [vmem:[#allocation11 + $0x198] ss:$28 sps:$4 sm:$0xff]   ;;  %v3545_v10 = vld [vmem:[#allocation11 + $0x164] ss:$28 sps:$4 sm:$0xff]  }
 0x2e9   :  { %v3540_v8 = vld [vmem:[#allocation11 + $0x518] ss:$28 sps:$4 sm:$0xff]  }
 0x2eb   :  { %2602 = vmatpush1.bf16.msra.mxu0 %v3459_v12  ;;  %2643 = vmatpush1.bf16.msra.mxu1 %v3462_v13  ;;  %v3548_v12 = vld [vmem:[#allocation11 + $0x4e4] ss:$28 sps:$4 sm:$0xff]  }
 0x2ec   :  { %2603 = vmatprep.subr.bf16.mxu0 %v3467_v14  ;;  %2644 = vmatprep.subr.bf16.mxu1 %v3470_v16  ;;  %v3543_v13 = vld [vmem:[#allocation11 + $0x160] ss:$28 sps:$4 sm:$0xff]   ;;  %v3551_v16 = vld [vmem:[#allocation11 + $0x12c] ss:$28 sps:$4 sm:$0xff]  }
 0x2ed   :  { %v3546_v14 = vld [vmem:[#allocation11 + $0x4e0] ss:$28 sps:$4 sm:$0xff]  }
 0x2ef   :  { %2604 = vmatpush1.bf16.msra.mxu0 %v3465_v17  ;;  %2645 = vmatpush1.bf16.msra.mxu1 %v3468_v20  ;;  %v3554_v17 = vld [vmem:[#allocation11 + $0x4ac] ss:$28 sps:$4 sm:$0xff]  }
 0x2f0   :  { %2605 = vmatprep.subr.bf16.mxu0 %v3473_v15  ;;  %2646 = vmatprep.subr.bf16.mxu1 %v3476_v21  ;;  %v3549_v20 = vld [vmem:[#allocation11 + $0x128] ss:$28 sps:$4 sm:$0xff]   ;;  %v3557_v21 = vld [vmem:[#allocation11 + $0xf4] ss:$28 sps:$4 sm:$0xff]  }
 0x2f1   :  { %v3552_v15 = vld [vmem:[#allocation11 + $0x4a8] ss:$28 sps:$4 sm:$0xff]  }
 0x2f3   :  { %2606 = vmatpush1.bf16.msra.mxu0 %v3471_v22  ;;  %2647 = vmatpush1.bf16.msra.mxu1 %v3474_v23  ;;  %v3560_v22 = vld [vmem:[#allocation11 + $0x474] ss:$28 sps:$4 sm:$0xff]  }
 0x2f4   :  { %2607 = vmatprep.subr.bf16.mxu0 %v3479_v26  ;;  %2648 = vmatprep.subr.bf16.mxu1 %v3482_v28  ;;  %v3555_v23 = vld [vmem:[#allocation11 + $0xf0] ss:$28 sps:$4 sm:$0xff]   ;;  %v3563_v28 = vld [vmem:[#allocation11 + $0xbc] ss:$28 sps:$4 sm:$0xff]  }
 0x2f5   :  { %v3558_v26 = vld [vmem:[#allocation11 + $0x470] ss:$28 sps:$4 sm:$0xff]  }
 0x2f7   :  { %2608 = vmatpush1.bf16.msra.mxu0 %v3477_v29  ;;  %2649 = vmatpush1.bf16.msra.mxu1 %v3480_v30  ;;  %v3566_v29 = vld [vmem:[#allocation11 + $0x43c] ss:$28 sps:$4 sm:$0xff]  }
 0x2f8   :  { %2609 = vmatprep.subr.bf16.mxu0 %v3485_v32  ;;  %2650 = vmatprep.subr.bf16.mxu1 %v3488_v33  ;;  %v3561_v30 = vld [vmem:[#allocation11 + $0xb8] ss:$28 sps:$4 sm:$0xff]   ;;  %v3569_v33 = vld [vmem:[#allocation11 + $0x84] ss:$28 sps:$4 sm:$0xff]  }
 0x2f9   :  { %v3564_v32 = vld [vmem:[#allocation11 + $0x438] ss:$28 sps:$4 sm:$0xff]  }
 0x2fb   :  { %2610 = vmatpush1.bf16.msra.mxu0 %v3483_v34  ;;  %2651 = vmatpush1.bf16.msra.mxu1 %v3486_v35  ;;  %v3572_v34 = vld [vmem:[#allocation11 + $0x404] ss:$28 sps:$4 sm:$0xff]  }
 0x2fc   :  { %2611 = vmatprep.subr.bf16.mxu0 %v3491_v36  ;;  %2652 = vmatprep.subr.bf16.mxu1 %v3494_v37  ;;  %v3567_v35 = vld [vmem:[#allocation11 + $0x80] ss:$28 sps:$4 sm:$0xff]   ;;  %v3575_v37 = vld [vmem:[#allocation11 + $0x4c] ss:$28 sps:$4 sm:$0xff]  }
 0x2fd   :  { %v3570_v36 = vld [vmem:[#allocation11 + $0x400] ss:$28 sps:$4 sm:$0xff]  }
 0x2ff   :  { %2612 = vmatpush2.bf16.msra.mxu0 %v3489_v39  ;;  %2653 = vmatpush2.bf16.msra.mxu1 %v3492_v41  ;;  %v3578_v39 = vld [vmem:[#allocation11 + $0x3cc] ss:$28 sps:$4 sm:$0xff]  }
 0x300   :  { %2613 = vmatprep.subr.bf16.mxu0 %v3497_v43  ;;  %2654 = vmatprep.subr.bf16.mxu1 %v3500_v44  ;;  %v3573_v41 = vld [vmem:[#allocation11 + $0x48] ss:$28 sps:$4 sm:$0xff]   ;;  %v3581_v44 = vld [vmem:[#allocation11 + $0x14] ss:$28 sps:$4 sm:$0xff]  }
 0x301   :  { %v3576_v43 = vld [vmem:[#allocation11 + $0x3c8] ss:$28 sps:$4 sm:$0xff]  }
 0x303   :  { %2614 = vmatpush2.bf16.msra.mxu0 %v3495_v31  ;;  %2655 = vmatpush2.bf16.msra.mxu1 %v3498_v27  ;;  %v3584_v31 = vld [vmem:[#allocation11 + $0x394] ss:$28 sps:$4 sm:$0xff]  }
 0x304   :  { %2615 = vmatprep.subr.bf16.mxu0 %v3503_v45  ;;  %2656 = vmatprep.subr.bf16.mxu1 %v3506_v47  ;;  %v3579_v27 = vld [vmem:[#allocation11 + $0x10] ss:$28 sps:$4 sm:$0xff]   ;;  %v3587_v47 = vld [vmem:[#allocation11 + $0x35c] ss:$28 sps:$4 sm:$0xff]  }
 0x305   :  { %v3582_v45 = vld [vmem:[#allocation11 + $0x390] ss:$28 sps:$4 sm:$0xff]  }
 0x307   :  { %2616 = vmatpush2.bf16.msra.mxu0 %v3501_v40  ;;  %2657 = vmatpush2.bf16.msra.mxu1 %v3504_v42  ;;  %v3590_v40 = vld [vmem:[#allocation11 + $0x6dc] ss:$28 sps:$4 sm:$0xff]  }
 0x308   :  { %2617 = vmatprep.subr.bf16.mxu0 %v3509_v48  ;;  %2658 = vmatprep.subr.bf16.mxu1 %v3512_v49  ;;  %v3585_v42 = vld [vmem:[#allocation11 + $0x358] ss:$28 sps:$4 sm:$0xff]   ;;  %v3593_v49 = vld [vmem:[#allocation11 + $0x324] ss:$28 sps:$4 sm:$0xff]  }
 0x309   :  { %v3588_v48 = vld [vmem:[#allocation11 + $0x6d8] ss:$28 sps:$4 sm:$0xff]  }
 0x30b   :  { %2618 = vmatpush2.bf16.msra.mxu0 %v3507_v50  ;;  %2659 = vmatpush2.bf16.msra.mxu1 %v3510_v53  ;;  %v3596_v50 = vld [vmem:[#allocation11 + $0x6a4] ss:$28 sps:$4 sm:$0xff]  }
 0x30c   :  { %2619 = vmatprep.subr.bf16.mxu0 %v3515_v54  ;;  %2660 = vmatprep.subr.bf16.mxu1 %v3518_v55  ;;  %v3591_v53 = vld [vmem:[#allocation11 + $0x320] ss:$28 sps:$4 sm:$0xff]   ;;  %v3599_v55 = vld [vmem:[#allocation11 + $0x2ec] ss:$28 sps:$4 sm:$0xff]  }
 0x30d   :  { %v3594_v54 = vld [vmem:[#allocation11 + $0x6a0] ss:$28 sps:$4 sm:$0xff]  }
 0x30f   :  { %2620 = vmatpush2.bf16.msra.mxu0 %v3513_v56  ;;  %2661 = vmatpush2.bf16.msra.mxu1 %v3516_v11  ;;  %v3602_v56 = vld [vmem:[#allocation11 + $0x66c] ss:$28 sps:$4 sm:$0xff]  }
 0x310   :  { %2621 = vmatprep.subr.bf16.mxu0 %v3521_v57  ;;  %2662 = vmatprep.subr.bf16.mxu1 %v3524_v58  ;;  %v3597_v11 = vld [vmem:[#allocation11 + $0x2e8] ss:$28 sps:$4 sm:$0xff]   ;;  %v3605_v58 = vld [vmem:[#allocation11 + $0x2b4] ss:$28 sps:$4 sm:$0xff]  }
 0x311   :  { %v3600_v57 = vld [vmem:[#allocation11 + $0x668] ss:$28 sps:$4 sm:$0xff]  }
 0x313   :  { %2622 = vmatpush2.bf16.msra.mxu0 %v3519_v52  ;;  %2663 = vmatpush2.bf16.msra.mxu1 %v3522_v59  ;;  %v3608_v52 = vld [vmem:[#allocation11 + $0x634] ss:$28 sps:$4 sm:$0xff]  }
 0x314   :  { %2623 = vmatprep.subr.bf16.mxu0 %v3527_v51  ;;  %2664 = vmatprep.subr.bf16.mxu1 %v3530_v46  ;;  %v3603_v59 = vld [vmem:[#allocation11 + $0x2b0] ss:$28 sps:$4 sm:$0xff]   ;;  %v3611_v46 = vld [vmem:[#allocation11 + $0x27c] ss:$28 sps:$4 sm:$0xff]  }
 0x315   :  { %v3606_v51 = vld [vmem:[#allocation11 + $0x630] ss:$28 sps:$4 sm:$0xff]  }
 0x317   :  { %2624 = vmatpush2.bf16.msra.mxu0 %v3525_v61  ;;  %2665 = vmatpush2.bf16.msra.mxu1 %v3528_v0  ;;  %v3614_v61 = vld [vmem:[#allocation11 + $0x5fc] ss:$28 sps:$4 sm:$0xff]  }
 0x318   :  { %2625 = vmatprep.subr.bf16.mxu0 %v3533_v1  ;;  %2666 = vmatprep.subr.bf16.mxu1 %v3536_v2  ;;  %v3609_v0 = vld [vmem:[#allocation11 + $0x278] ss:$28 sps:$4 sm:$0xff]   ;;  %v3617_v2 = vld [vmem:[#allocation11 + $0x244] ss:$28 sps:$4 sm:$0xff]  }
 0x319   :  { %v3612_v1 = vld [vmem:[#allocation11 + $0x5f8] ss:$28 sps:$4 sm:$0xff]  }
 0x31b   :  { %2626 = vmatpush2.bf16.msra.mxu0 %v3531_v3  ;;  %2667 = vmatpush2.bf16.msra.mxu1 %v3534_v4  ;;  %v3620_v3 = vld [vmem:[#allocation11 + $0x5c4] ss:$28 sps:$4 sm:$0xff]  }
 0x31c   :  { %2677 = vmatprep.subr.bf16.mxu0 %v3539_v5  ;;  %2718 = vmatprep.subr.bf16.mxu1 %v3542_v6  ;;  %v3615_v4 = vld [vmem:[#allocation11 + $0x240] ss:$28 sps:$4 sm:$0xff]   ;;  %v3623_v6 = vld [vmem:[#allocation11 + $0x20c] ss:$28 sps:$4 sm:$0xff]  }
 0x31d   :  { %v3618_v5 = vld [vmem:[#allocation11 + $0x5c0] ss:$28 sps:$4 sm:$0xff]  }
 0x31e   :  { %2628 = vmatmul.mubr.bf16.vlgmr.msra.gmra.mxu0 %v4040_v62  ;;  %2669 = vmatmul.mubr.bf16.vlgmr.msra.gmra.mxu1 %v4042_v63 }
 0x31f   :  { %2678 = vmatpush1.bf16.msra.mxu0 %v3537_v7  ;;  %2709 = vmatprep.mubr.bf16.mxu0 %v4036_v60  ;;  %v3626_v7 = vld [vmem:[#allocation11 + $0x58c] ss:$28 sps:$4 sm:$0xff]  }
 0x320   :  { %2719 = vmatpush1.bf16.msra.mxu1 %v3540_v8  ;;  %2750 = vmatprep.mubr.bf16.mxu1 %v4038_v38  ;;  %v3621_v8 = vld [vmem:[#allocation11 + $0x208] ss:$28 sps:$4 sm:$0xff]  }
 0x321   :  { %2679 = vmatprep.subr.bf16.mxu0 %v3545_v10  ;;  %2720 = vmatprep.subr.bf16.mxu1 %v3548_v12  ;;  %v3624_v10 = vld [vmem:[#allocation11 + $0x588] ss:$28 sps:$4 sm:$0xff]   ;;  %v3629_v12 = vld [vmem:[#allocation11 + $0x1d4] ss:$28 sps:$4 sm:$0xff]  }
 0x323   :  { %2680 = vmatpush1.bf16.msra.mxu0 %v3543_v13  ;;  %v3632_v13 = vld [vmem:[#allocation11 + $0x554] ss:$28 sps:$4 sm:$0xff]  }
 0x324   :  { %2721 = vmatpush1.bf16.msra.mxu1 %v3546_v14  ;;  %2681 = vmatprep.subr.bf16.mxu0 %v3551_v16  ;;  %v3627_v14 = vld [vmem:[#allocation11 + $0x1d0] ss:$28 sps:$4 sm:$0xff]  }
 0x325   :  { %2722 = vmatprep.subr.bf16.mxu1 %v3554_v17  ;;  %v3630_v16 = vld [vmem:[#allocation11 + $0x550] ss:$28 sps:$4 sm:$0xff]   ;;  %v3633_v17 = vld [vmem:[#allocation11 + $0x360] ss:$28 sps:$4 sm:$0xff]  }
 0x327   :  { %2682 = vmatpush1.bf16.msra.mxu0 %v3549_v20  ;;  %v3634_v20 = vld [vmem:[#allocation11 + $0x6e0] ss:$28 sps:$4 sm:$0xff]  }
 0x328   :  { %2723 = vmatpush1.bf16.msra.mxu1 %v3552_v15  ;;  %2683 = vmatprep.subr.bf16.mxu0 %v3557_v21  ;;  %v3635_v15 = vld [vmem:[#allocation11 + $0x1a0] ss:$28 sps:$4 sm:$0xff]  }
 0x329   :  { %2724 = vmatprep.subr.bf16.mxu1 %v3560_v22  ;;  %v3636_v21 = vld [vmem:[#allocation11 + $0x520] ss:$28 sps:$4 sm:$0xff]   ;;  %v3637_v22 = vld [vmem:[#allocation11 + $0x328] ss:$28 sps:$4 sm:$0xff]  }
 0x32b   :  { %2684 = vmatpush1.bf16.msra.mxu0 %v3555_v23  ;;  %v3638_v23 = vld [vmem:[#allocation11 + $0x6a8] ss:$28 sps:$4 sm:$0xff]  }
 0x32c   :  { %2725 = vmatpush1.bf16.msra.mxu1 %v3558_v26  ;;  %2685 = vmatprep.subr.bf16.mxu0 %v3563_v28  ;;  %v3639_v26 = vld [vmem:[#allocation11 + $0x168] ss:$28 sps:$4 sm:$0xff]  }
 0x32d   :  { %2726 = vmatprep.subr.bf16.mxu1 %v3566_v29  ;;  %v3640_v28 = vld [vmem:[#allocation11 + $0x4e8] ss:$28 sps:$4 sm:$0xff]   ;;  %v3641_v29 = vld [vmem:[#allocation11 + $0x2f0] ss:$28 sps:$4 sm:$0xff]  }
 0x32f   :  { %2686 = vmatpush1.bf16.msra.mxu0 %v3561_v30  ;;  %v3642_v30 = vld [vmem:[#allocation11 + $0x670] ss:$28 sps:$4 sm:$0xff]  }
 0x330   :  { %2727 = vmatpush1.bf16.msra.mxu1 %v3564_v32  ;;  %2687 = vmatprep.subr.bf16.mxu0 %v3569_v33  ;;  %v3643_v32 = vld [vmem:[#allocation11 + $0x130] ss:$28 sps:$4 sm:$0xff]  }
 0x331   :  { %2728 = vmatprep.subr.bf16.mxu1 %v3572_v34  ;;  %v3644_v33 = vld [vmem:[#allocation11 + $0x4b0] ss:$28 sps:$4 sm:$0xff]   ;;  %v3645_v34 = vld [vmem:[#allocation11 + $0x2b8] ss:$28 sps:$4 sm:$0xff]  }
 0x333   :  { %2688 = vmatpush1.bf16.msra.mxu0 %v3567_v35  ;;  %v3646_v35 = vld [vmem:[#allocation11 + $0x638] ss:$28 sps:$4 sm:$0xff]  }
 0x334   :  { %2729 = vmatpush1.bf16.msra.mxu1 %v3570_v36  ;;  %2689 = vmatprep.subr.bf16.mxu0 %v3575_v37  ;;  %v3647_v36 = vld [vmem:[#allocation11 + $0xf8] ss:$28 sps:$4 sm:$0xff]   ;;  %v3649_v37 = vld [vmem:[#allocation11 + $0x280] ss:$28 sps:$4 sm:$0xff]  }
 0x335   :  { %2730 = vmatprep.subr.bf16.mxu1 %v3578_v39  ;;  %v3650_v39 = vld [vmem:[#allocation11 + $0x600] ss:$28 sps:$4 sm:$0xff]  }
 0x337   :  { %2690 = vmatpush1.bf16.msra.mxu0 %v3573_v41  ;;  %v3652_v41 = vld [vmem:[#allocation11 + $0x440] ss:$28 sps:$4 sm:$0xff]  }
 0x338   :  { %2731 = vmatpush1.bf16.msra.mxu1 %v3576_v43  ;;  %2691 = vmatprep.subr.bf16.mxu0 %v3581_v44  ;;  %v3653_v43 = vld [vmem:[#allocation11 + $0x248] ss:$28 sps:$4 sm:$0xff]  }
 0x339   :  { %2732 = vmatprep.subr.bf16.mxu1 %v3584_v31  ;;  %v3654_v44 = vld [vmem:[#allocation11 + $0x5c8] ss:$28 sps:$4 sm:$0xff]  }
 0x33a   :  { %v3655_v31 = vld [vmem:[#allocation11 + $0x88] ss:$28 sps:$4 sm:$0xff]  }
 0x33b   :  { %2692 = vmatpush1.bf16.msra.mxu0 %v3579_v27  ;;  %v3656_v27 = vld [vmem:[#allocation11 + $0x408] ss:$28 sps:$4 sm:$0xff]  }
 0x33c   :  { %2733 = vmatpush1.bf16.msra.mxu1 %v3582_v45  ;;  %2693 = vmatprep.subr.bf16.mxu0 %v3587_v47  ;;  %v3657_v45 = vld [vmem:[#allocation11 + $0x210] ss:$28 sps:$4 sm:$0xff]  }
 0x33d   :  { %2734 = vmatprep.subr.bf16.mxu1 %v3590_v40  ;;  %v3658_v47 = vld [vmem:[#allocation11 + $0x590] ss:$28 sps:$4 sm:$0xff]  }
 0x33e   :  { %v3659_v40 = vld [vmem:[#allocation11 + $0x50] ss:$28 sps:$4 sm:$0xff]  }
 0x33f   :  { %2694 = vmatpush2.bf16.msra.mxu0 %v3585_v42  ;;  %v3660_v42 = vld [vmem:[#allocation11 + $0x3d0] ss:$28 sps:$4 sm:$0xff]  }
 0x340   :  { %2735 = vmatpush2.bf16.msra.mxu1 %v3588_v48  ;;  %2695 = vmatprep.subr.bf16.mxu0 %v3593_v49  ;;  %v3661_v48 = vld [vmem:[#allocation11 + $0x1d8] ss:$28 sps:$4 sm:$0xff]  }
 0x341   :  { %2736 = vmatprep.subr.bf16.mxu1 %v3596_v50  ;;  %v3662_v49 = vld [vmem:[#allocation11 + $0x558] ss:$28 sps:$4 sm:$0xff]  }
 0x342   :  { %v3663_v50 = vld [vmem:[#allocation11 + $0x18] ss:$28 sps:$4 sm:$0xff]  }
 0x343   :  { %2696 = vmatpush2.bf16.msra.mxu0 %v3591_v53  ;;  %v3664_v53 = vld [vmem:[#allocation11 + $0x398] ss:$28 sps:$4 sm:$0xff]  }
 0x344   :  { %2737 = vmatpush2.bf16.msra.mxu1 %v3594_v54  ;;  %2697 = vmatprep.subr.bf16.mxu0 %v3599_v55  ;;  %v4063_v54 = vld [vmem:[%s4092_s10] sm:$0xff]  ;;  %s3856_s10 = smov [#allocation13]  }
 0x345   :  { %2738 = vmatprep.subr.bf16.mxu1 %v3602_v56  ;;  %v1329_v55 = vrot.slane %v4063_v54, %v3969_v18  ;;  %v1333_v56 = vrot.slane %v4063_v54, %v3972_v19  ;;  %v1337_v19 = vrot.slane %v4063_v54, %v4013_v24  ;;  %s2859_s3 = sshll.u32 %s3856_s10, 4  ;;  %s2860_s3 = int_to_ptr.vmem [resolvable:$true] %s2859_s3 }
 0x346   :  { %s3811_s15 = scalar_lea.vmem %s2860_s3, 896  ;;  %p3816_p3 = scmp.lt.s32.totalorder %s2860_s3, %s2860_s3 }
 0x347   :  { %2698 = vmatpush2.bf16.msra.mxu0 %v3597_v11  ;;  %p3812_p2 = scmp.ne.s32.totalorder %s2860_s3, %s3811_s15  ;;  %p3817_p4 = scmp.lt.s32.totalorder %s3811_s15, %s3811_s15 }
 0x348   :  { %2739 = vmatpush2.bf16.msra.mxu1 %v3600_v57  ;;  %2699 = vmatprep.subr.bf16.mxu0 %v3605_v58 }
 0x349   :  { %2740 = vmatprep.subr.bf16.mxu1 %v3608_v52  ;;  %p3818_p5 = por %p3817_p4, %p3816_p3 }
 0x34b   :  { %2700 = vmatpush2.bf16.msra.mxu0 %v3603_v59  ;;  %p3819_p6 = pnand %p3818_p5, %p3812_p2 }
 0x34c   :  { %2741 = vmatpush2.bf16.msra.mxu1 %v3606_v51  ;;  %2701 = vmatprep.subr.bf16.mxu0 %v3611_v46 }
 0x34d   :  { %2742 = vmatprep.subr.bf16.mxu1 %v3614_v61 }
 0x34f   :  { %2702 = vmatpush2.bf16.msra.mxu0 %v3609_v0 }
 0x350   :  { %2743 = vmatpush2.bf16.msra.mxu1 %v3612_v1  ;;  %2703 = vmatprep.subr.bf16.mxu0 %v3617_v2 }
 0x351   :  { %2744 = vmatprep.subr.bf16.mxu1 %v3620_v3  ;;  %v1341_v3 = vrot.slane %v4063_v54, %v4016_v25  ;;  %v1344_v25 = vsub.s32 4, %v3961_v9 }
 0x353   :  { %2704 = vmatpush2.bf16.msra.mxu0 %v3615_v4 }
 0x354   :  { %2745 = vmatpush2.bf16.msra.mxu1 %v3618_v5  ;;  %2705 = vmatprep.subr.bf16.mxu0 %v3623_v6 }
 0x355   :  { %2746 = vmatprep.subr.bf16.mxu1 %v3626_v7 }
 0x357   :  { %2706 = vmatpush2.bf16.msra.mxu0 %v3621_v8 }
 0x358   :  { %2747 = vmatpush2.bf16.msra.mxu1 %v3624_v10  ;;  %2707 = vmatprep.subr.bf16.mxu0 %v3629_v12 }
 0x359   :  { %2748 = vmatprep.subr.bf16.mxu1 %v3632_v13 }
 0x35b   :  { %2708 = vmatpush2.bf16.msra.mxu0 %v3627_v14 }
 0x35c   :  { %2749 = vmatpush2.bf16.msra.mxu1 %v3630_v16  ;;  %3173 = vmatprep.subr.bf16.mxu0 %v3633_v17 }
 0x35d   :  { %3195 = vmatprep.subr.bf16.mxu1 %v3634_v20 }
 0x35e   :  { %2710 = vmatmul.mubr.bf16.vlgmr.msra.gmra.mxu0 %v4040_v62 }
 0x35f   :  { %2751 = vmatmul.mubr.bf16.vlgmr.msra.gmra.mxu1 %v4042_v63  ;;  %3174 = vmatpush3.bf16.msra.mxu0 %v3635_v15 }
 0x360   :  { %2791 = vmatprep.mubr.bf16.mxu0 %v4036_v60  ;;  %3196 = vmatpush3.bf16.msra.mxu1 %v3636_v21  ;;  %v3648_v60 = vld [vmem:[#allocation11 + $0x478] ss:$28 sps:$4 sm:$0xff]   ;;  %v1348_v21 = vsub.s32 5, %v3961_v9 }
 0x361   :  { %2831 = vmatprep.mubr.bf16.mxu1 %v4038_v38  ;;  %3175 = vmatprep.subr.bf16.mxu0 %v3637_v22  ;;  %v3651_v38 = vld [vmem:[#allocation11 + $0xc0] ss:$28 sps:$4 sm:$0xff]   ;;  %v1345_v22 = vrot.slane %v4063_v54, %v1344_v25 }
 0x362   :  { %3197 = vmatprep.subr.bf16.mxu1 %v3638_v23  ;;  %v1349_v23 = vrot.slane %v4063_v54, %v1348_v21 }
 0x363   :  { %3176 = vmatpush3.bf16.msra.mxu0 %v3639_v26 }
 0x364   :  { %3198 = vmatpush3.bf16.msra.mxu1 %v3640_v28  ;;  %3177 = vmatprep.subr.bf16.mxu0 %v3641_v29 }
 0x365   :  { %3199 = vmatprep.subr.bf16.mxu1 %v3642_v30 }
 0x367   :  { %3178 = vmatpush3.bf16.msra.mxu0 %v3643_v32 }
 0x368   :  { %3200 = vmatpush3.bf16.msra.mxu1 %v3644_v33  ;;  %3179 = vmatprep.subr.bf16.mxu0 %v3645_v34 }
 0x369   :  { %3201 = vmatprep.subr.bf16.mxu1 %v3646_v35 }
 0x36b   :  { %3180 = vmatpush3.bf16.msra.mxu0 %v3647_v36 }
 0x36c   :  { %3202 = vmatpush3.bf16.msra.mxu1 %v3648_v60  ;;  %3181 = vmatprep.subr.bf16.mxu0 %v3649_v37 }
 0x36d   :  { %3203 = vmatprep.subr.bf16.mxu1 %v3650_v39 }
 0x36f   :  { %3182 = vmatpush3.bf16.msra.mxu0 %v3651_v38 }
 0x370   :  { %3204 = vmatpush3.bf16.msra.mxu1 %v3652_v41  ;;  %3183 = vmatprep.subr.bf16.mxu0 %v3653_v43  ;;  %v1352_v43 = vsub.s32 6, %v3961_v9 }
 0x371   :  { %3205 = vmatprep.subr.bf16.mxu1 %v3654_v44 }
 0x373   :  { %3184 = vmatpush3.bf16.msra.mxu0 %v3655_v31 }
 0x374   :  { %3206 = vmatpush3.bf16.msra.mxu1 %v3656_v27  ;;  %3185 = vmatprep.subr.bf16.mxu0 %v3657_v45  ;;  %v1353_v27 = vrot.slane %v4063_v54, %v1352_v43 }
 0x375   :  { %3207 = vmatprep.subr.bf16.mxu1 %v3658_v47 }
 0x377   :  { %3186 = vmatpush3.bf16.msra.mxu0 %v3659_v40 }
 0x378   :  { %3208 = vmatpush3.bf16.msra.mxu1 %v3660_v42  ;;  %3187 = vmatprep.subr.bf16.mxu0 %v3661_v48 }
 0x379   :  { %3209 = vmatprep.subr.bf16.mxu1 %v3662_v49 }
 0x37b   :  { %3188 = vmatpush3.bf16.msra.mxu0 %v3663_v50 }
 0x37c   :  { %3210 = vmatpush3.bf16.msra.mxu1 %v3664_v53 }
 0x37e   :  { %2792 = vmatmul.mubr.bf16.vlgmr.msra.gmra.mxu0 %v4040_v62 }
 0x37f   :  { %2832 = vmatmul.mubr.bf16.vlgmr.msra.gmra.mxu1 %v4042_v63 }
 0x39e   :  { %v2547_v11 = vpop.f32.mrf.mxu0  ;;  %v2588_v57 = vpop.f32.mrf.mxu1 }
 0x39f   :  { %v2548_v58 = vadd.f32 %v2547_v11, %v1329_v55 }
 0x3a0   :  { %v2549_v52 = vpop.f32.mrf.mxu0  ;;  %v2590_v59 = vpop.f32.mrf.mxu1 }
 0x3a1   :  { %v2589_v51 = vadd.f32 %v2588_v57, %v2548_v58  ;;  %v2550_v62 = vadd.f32 %v2549_v52, %v1333_v56 }
 0x3a2   :  { %v2551_v46 = vpop.f32.mrf.mxu0  ;;  %v2592_v63 = vpop.f32.mrf.mxu1 }
 0x3a3   :  { %3677 = vtanh.f32 %v2589_v51  ;;  %v2591_v61 = vadd.f32 %v2590_v59, %v2550_v62 }
 0x3a4   :  { %v2552_v0 = vpop.f32.mrf.mxu0  ;;  %v2593_v1 = vpop.f32.mrf.mxu1 }
 0x3a5   :  { %3679 = vtanh.f32 %v2591_v61 }
 0x3b0   :  { %v3678_v2 = vpop.eup %3677 }
 0x3b1   :  { %2846 = vst [vmem:[#allocation13] sm:$0xff] %v3678_v2 }
 0x3b2   :  { %v3680_v18 = vpop.eup %3679 }
 0x3b3   :  { %2847 = vst [vmem:[#allocation13 + $0x8] sm:$0xff] %v3680_v18 }
 0x3de   :  { %v2629_v4 = vpop.f32.mrf.mxu0  ;;  %v2670_v5 = vpop.f32.mrf.mxu1 }
 0x3df   :  { %v2630_v6 = vadd.f32 %v2629_v4, %v1337_v19 }
 0x3e0   :  { %v2631_v7 = vpop.f32.mrf.mxu0  ;;  %v2672_v8 = vpop.f32.mrf.mxu1 }
 0x3e1   :  { %v2671_v10 = vadd.f32 %v2670_v5, %v2630_v6  ;;  %v2632_v12 = vadd.f32 %v2631_v7, %v1341_v3 }
 0x3e2   :  { %v2633_v13 = vpop.f32.mrf.mxu0  ;;  %v2674_v14 = vpop.f32.mrf.mxu1 }
 0x3e3   :  { %3681 = vtanh.f32 %v2671_v10  ;;  %v2673_v16 = vadd.f32 %v2672_v8, %v2632_v12 }
 0x3e4   :  { %v2634_v17 = vpop.f32.mrf.mxu0  ;;  %v2675_v20 = vpop.f32.mrf.mxu1 }
 0x3e5   :  { %3683 = vtanh.f32 %v2673_v16 }
 0x3f0   :  { %v3682_v15 = vpop.eup %3681 }
 0x3f1   :  { %2848 = vst [vmem:[#allocation13 + $0x10] sm:$0xff] %v3682_v15 }
 0x3f2   :  { %v3684_v24 = vpop.eup %3683 }
 0x3f3   :  { %2849 = vst [vmem:[#allocation13 + $0x18] sm:$0xff] %v3684_v24 }
 0x41e   :  { %v2711_v26 = vpop.f32.mrf.mxu0 }
 0x41f   :  { %v2712_v28 = vadd.f32 %v2711_v26, %v1345_v22  ;;  %v2752_v29 = vpop.f32.mrf.mxu1 }
 0x420   :  { %v2713_v30 = vpop.f32.mrf.mxu0 }
 0x421   :  { %v2753_v32 = vadd.f32 %v2752_v29, %v2712_v28  ;;  %v2714_v33 = vadd.f32 %v2713_v30, %v1349_v23  ;;  %v2754_v34 = vpop.f32.mrf.mxu1 }
 0x422   :  { %v2715_v35 = vpop.f32.mrf.mxu0 }
 0x423   :  { %3685 = vtanh.f32 %v2753_v32  ;;  %v2755_v36 = vadd.f32 %v2754_v34, %v2714_v33  ;;  %v2756_v60 = vpop.f32.mrf.mxu1 }
 0x424   :  { %v2716_v37 = vpop.f32.mrf.mxu0 }
 0x425   :  { %3687 = vtanh.f32 %v2755_v36  ;;  %v2757_v39 = vpop.f32.mrf.mxu1 }
 0x430   :  { %v3686_v38 = vpop.eup %3685 }
 0x431   :  { %2850 = vst [vmem:[#allocation13 + $0x20] sm:$0xff] %v3686_v38 }
 0x432   :  { %v3688_v41 = vpop.eup %3687 }
 0x433   :  { %2851 = vst [vmem:[#allocation13 + $0x28] sm:$0xff] %v3688_v41 }
 0x43e   :  { %v3189_v44 = vpop.f32.mrf.mxu0 }
 0x43f   :  { %v3211_v31 = vpop.f32.mrf.mxu1 }
 0x440   :  { %v3190_v45 = vpop.f32.mrf.mxu0 }
 0x441   :  { %v3191_v47 = vadd.f32 %v3190_v45, %v3189_v44  ;;  %v3212_v40 = vpop.f32.mrf.mxu1 }
 0x442   :  { %v3192_v42 = vpop.f32.mrf.mxu0  ;;  %v3213_v49 = vadd.f32 %v3212_v40, %v3211_v31 }
 0x443   :  { %v2794_v48 = vadd.f32 %v3191_v47, %v1353_v27  ;;  %v3214_v50 = vpop.f32.mrf.mxu1 }
 0x444   :  { %v3193_v53 = vpop.f32.mrf.mxu0 }
 0x445   :  { %v2834_v55 = vadd.f32 %v3213_v49, %v2794_v48  ;;  %v3215_v56 = vpop.f32.mrf.mxu1 }
 0x447   :  { %3689 = vtanh.f32 %v2834_v55 }
 0x454   :  { %v3690_v11 = vpop.eup %3689 }
 0x455   :  { %2852 = vst [vmem:[#allocation13 + $0x30] sm:$0xff] %v3690_v11 }
 0x456   :  { %3822 = shalt.err (!%p3819_p6)
}
 0x457   :  { %2862 = dma.vmem_to_hbm [thread:$0]  %s2860_s3, 896, %s4093_s11, [#allocation4]  }
 0x458   :  { %3839 = dma.done.wait [#allocation4], 896  }
 0x459   :  { %3840 = vsyncadd [#allocation4], 4294966400 }
 0x45a   :  { %2866 = vsyncpa [#allocation3], 1 }
 0x45b   :  { %2867 = vsyncpa [#allocation6], 1 }
 0x45c   :  { %2868 = vsyncpa [#allocation9], 1 }
 0x45d   :  { %2869 = vsyncpa [#allocation12], 1 }
 0x45e   :  { %2870 = vsyncpa [#allocation4], 1 }

</bundles_post_ra>
